<compile_context>
chip_gen: v7x
topology: tpu7x:2x2x1
jax: 0.10.0
libtpu: 0.0.40
codegen_flags: <defaults>
</compile_context>

<pallas_src>
import jax
import jax.numpy as jnp
from jax.experimental import pallas as pl
from jax.experimental.pallas import tpu as pltpu


_SINGLE_BLOCK_BYTES = 1 << 20    # below this: one block (dispatch-bound anyway)
_TILE_TARGET_BYTES = 4 << 20     # per-input-tile target (v7x friendly)
_VMEM_CAP_BYTES = 48 << 20       # leave headroom below v7x's 64 MiB per-TC VMEM
_RESIDENT_GATE_CAP = 2 << 20     # keep gate VMEM-resident only while it is small


def _round_up(x, m):
    return -(-x // m) * m


def _make_kernel(row_tile, resident_gate, multi_row_blocks):
    def kernel(gate_ref, x_ref, o_ref):
        if resident_gate and multi_row_blocks:
            # Gate is VMEM-resident across all grid steps; slice out this
            # row tile's column.  row_tile is a multiple of 8 on this path.
            start = pl.multiple_of(pl.program_id(0) * row_tile, 8)
            g = gate_ref[pl.ds(start, row_tile), :]
        else:
            g = gate_ref[...]
        # Sigmoid in f32 on the EUP (one value per row), then a dtype-native
        # broadcast multiply along lanes (bf16 stays packed on v6e/v7x).
        s = jax.nn.sigmoid(g.astype(jnp.float32))
        x = x_ref[...]
        o_ref[...] = (x * s.astype(x.dtype)).astype(o_ref.dtype)

    return kernel


def sigmoid_mul(x215, x211, *, row_tile=None, lane_tile=None):
    """x215: (N, C, 1, 1) gate, x211: (N, C, H, W) features -> x211 * sigmoid(x215)."""
    N, C, H, W = x211.shape
    assert x215.shape == (N, C, 1, 1)
    R, HW = N * C, H * W
    dtype = x211.dtype
    itemsize = jnp.dtype(dtype).itemsize
    pack = max(8, 32 // itemsize)                    # sublane packing: 8 f32, 16 bf16, 32 i8

    x2d = x211.reshape(R, HW)
    g2d = x215.reshape(R, 1)

    lanes_full = _round_up(HW, 128)                  # lane-padded last dim
    total_padded = _round_up(R, pack) * lanes_full * itemsize

    # ---- default tile selection --------------------------------------------
    if total_padded <= _SINGLE_BLOCK_BYTES:
        rt_def, lt_def = R, HW
    elif pack * lanes_full * itemsize > _TILE_TARGET_BYTES:
        # Huge H*W: even the minimal row tile overflows the target -> tile lanes.
        lt_def = max(128, (_TILE_TARGET_BYTES // (pack * itemsize)) // 128 * 128)
        lt_def = HW if lt_def >= HW else lt_def
        rt_def = min(pack, R)
    else:
        lt_def = HW
        rt = _TILE_TARGET_BYTES // (lanes_full * itemsize)
        rt = max(pack, (rt // pack) * pack)
        # >= 2 grid steps above the single-block cutoff: both v7x TensorCores
        # get work and the DMA/compute pipeline actually overlaps.
        half = max(pack, (((R + 1) // 2) // pack) * pack)
        rt = min(rt, half, R)
        # Prefer a tile that divides R: no masked tail block, balanced cores.
        for cand in range(rt, max(pack, rt // 2) - 1, -pack):
            if R % cand == 0:
                rt = cand
                break
        rt_def = rt

    row_tile = rt_def if row_tile is None else int(row_tile)
    lane_tile = lt_def if lane_tile is None else int(lane_tile)
    row_tile = min(row_tile, R)
    lane_tile = min(lane_tile, HW)
    if row_tile != R:
        row_tile = max(8, (row_tile // 8) * 8)       # (8, 128) block constraint
    if lane_tile != HW:
        lane_tile = max(128, (lane_tile // 128) * 128)

    grid = (pl.cdiv(R, row_tile), pl.cdiv(HW, lane_tile))

    # ---- gate residency ------------------------------------------------------
    gate_itemsize = jnp.dtype(x215.dtype).itemsize
    gate_pack = max(8, 32 // gate_itemsize)
    r_gate = grid[0] * row_tile                      # rows covered by a resident gate block
    resident_bytes = _round_up(max(r_gate, 1), gate_pack) * 128 * gate_itemsize
    resident_gate = resident_bytes <= _RESIDENT_GATE_CAP
    if resident_gate:
        if r_gate != R:
            # Pad so the in-kernel pl.ds slice of the tail block stays in bounds.
            g2d = jnp.pad(g2d, ((0, r_gate - R), (0, 0)))
        gate_spec = pl.BlockSpec((r_gate, 1), lambda i, j: (0, 0))
    else:
        gate_spec = pl.BlockSpec((row_tile, 1), lambda i, j: (i, 0))

    # ---- VMEM budget: actual tiles + gate + headroom, capped for v7x ---------
    tile_bytes = _round_up(row_tile, 8) * _round_up(lane_tile, 128) * itemsize
    need = 4 * tile_bytes                            # double-buffered input + output tiles
    if resident_gate:
        need += resident_bytes
    else:
        need += 2 * _round_up(row_tile, gate_pack) * 128 * gate_itemsize
    vmem_limit = int(min(max(need + (4 << 20), 16 << 20), _VMEM_CAP_BYTES))

    out2d = pl.pallas_call(
        _make_kernel(row_tile, resident_gate, grid[0] > 1),
        out_shape=jax.ShapeDtypeStruct((R, HW), dtype),
        grid_spec=pltpu.PrefetchScalarGridSpec(
            num_scalar_prefetch=0,
            grid=grid,
            in_specs=[
                gate_spec,
                pl.BlockSpec((row_tile, lane_tile), lambda i, j: (i, j)),
            ],
            out_specs=pl.BlockSpec((row_tile, lane_tile), lambda i, j: (i, j)),
        ),
        compiler_params=pltpu.CompilerParams(
            dimension_semantics=("parallel", "parallel"),
            vmem_limit_bytes=vmem_limit,
        ),
    )(g2d, x2d)

    return out2d.reshape(N, C, H, W)


if __name__ == "__main__":
    key = jax.random.PRNGKey(0)
    k1, k2, k3, k4 = jax.random.split(key, 4)

    # Module's real shapes: single-block path (dispatch-bound size).
    x211 = jax.random.normal(k1, (1, 672, 14, 14), dtype=jnp.float32)
    x215 = jax.random.normal(k2, (1, 672, 1, 1), dtype=jnp.float32)
    ref = x211 * jax.nn.sigmoid(x215)
    out = jax.block_until_ready(sigmoid_mul(x215, x211))
    assert out.shape == (1, 672, 14, 14)
    assert jnp.allclose(out, ref, atol=1e-6, rtol=1e-6)

    # Batched input: exercises the row-tiled path (2 even grid steps,
    # VMEM-resident gate, divisor-of-R tile -> no masked tail).
    xb = jax.random.normal(k3, (4, 672, 14, 14), dtype=jnp.float32)
    gb = jax.random.normal(k4, (4, 672, 1, 1), dtype=jnp.float32)
    refb = xb * jax.nn.sigmoid(gb)
    outb = jax.block_until_ready(sigmoid_mul(gb, xb))
    assert jnp.allclose(outb, refb, atol=1e-6, rtol=1e-6)

    # bf16 activations: exercises the dtype-native multiply path (v6e/v7x).
    xbf = xb.astype(jnp.bfloat16)
    gbf = gb.astype(jnp.bfloat16)
    ref_bf = xbf.astype(jnp.float32) * jax.nn.sigmoid(gbf.astype(jnp.float32))
    out_bf = jax.block_until_ready(sigmoid_mul(gbf, xbf))
    assert out_bf.dtype == jnp.bfloat16
    assert jnp.allclose(out_bf.astype(jnp.float32), ref_bf, atol=5e-2, rtol=5e-2)

    print("KERNEL_OK")
</pallas_src>

<mosaic_0001>
module attributes {stable_mosaic.version = 11 : i64} {
  func.func @kernel(%arg0: i32, %arg1: i32, %arg2: memref<672x1xf32, #tpu.memory_space<vmem>>, %arg3: memref<672x196xf32, #tpu.memory_space<vmem>>, %arg4: memref<672x196xf32, #tpu.memory_space<vmem>>) attributes {dimension_semantics = [#tpu.dimension_semantics<parallel>, #tpu.dimension_semantics<parallel>], iteration_bounds = array<i64: 1, 1>, scalar_prefetch = 0 : i64, scratch_operands = 0 : i64, tpu.core_type = #tpu.core_type<tc>, window_params = [{pipeline_mode = #tpu.pipeline_mode<synchronous>, transform_indices = @transform_0, window_bounds = array<i64: 672, 1>}, {transform_indices = @transform_1, window_bounds = array<i64: 672, 196>}, {transform_indices = @transform_2, window_bounds = array<i64: 672, 196>}]} {
    %c0 = arith.constant 0 : index
    %c0_0 = arith.constant 0 : index
    %0 = vector.load %arg2[%c0, %c0_0] : memref<672x1xf32, #tpu.memory_space<vmem>>, vector<672x1xf32>
    %1 = arith.negf %0 : vector<672x1xf32>
    %2 = math.exp %1 : vector<672x1xf32>
    %cst = arith.constant 1.000000e+00 : f32
    %3 = vector.broadcast %cst : f32 to vector<672x1xf32>
    %4 = arith.addf %3, %2 : vector<672x1xf32>
    %5 = arith.divf %3, %4 : vector<672x1xf32>
    %c0_1 = arith.constant 0 : index
    %c0_2 = arith.constant 0 : index
    %6 = vector.load %arg3[%c0_1, %c0_2] : memref<672x196xf32, #tpu.memory_space<vmem>>, vector<672x196xf32>
    %7 = vector.broadcast %5 : vector<672x1xf32> to vector<672x196xf32>
    %8 = arith.mulf %6, %7 : vector<672x196xf32>
    %c0_3 = arith.constant 0 : index
    %c0_4 = arith.constant 0 : index
    %9 = vector.load %arg4[%c0_3, %c0_4] : memref<672x196xf32, #tpu.memory_space<vmem>>, vector<672x196xf32>
    tpu.vector_store %arg4[%c0_3, %c0_4], %8 {strides = array<i32>} : memref<672x196xf32, #tpu.memory_space<vmem>>, vector<672x196xf32>,
    return
  }
  func.func @transform_0(%arg0: i32, %arg1: i32) -> (i32, i32) {
    %c0_i32 = arith.constant 0 : i32
    %c0_i32_0 = arith.constant 0 : i32
    %c0_i32_1 = arith.constant 0 : i32
    return %c0_i32, %c0_i32_0 : i32, i32
  }
  func.func @transform_1(%arg0: i32, %arg1: i32) -> (i32, i32) {
    %c0_i32 = arith.constant 0 : i32
    return %arg0, %arg1 : i32, i32
  }
  func.func @transform_2(%arg0: i32, %arg1: i32) -> (i32, i32) {
    %c0_i32 = arith.constant 0 : i32
    return %arg0, %arg1 : i32, i32
  }
}

</mosaic_0001>

<bundles_post_ra>
// kernel: tpu_custom_call.1
= control target key start
LH: loop header
LB: loop body
LE: loop exit
PB: predicated region body
PF: predicated region fallthrough
CT: control target
= control target key end

     0   :  { %v1951_v0 = vmov 0   ;;  %vm1356_vm0 = vcmask 556032   ;;  %s3311_s0 = inlined_call_operand.vmem [shape: f32[672,1], index: 0, kind: input, shape index: {}]   ;;  %s3312_s1 = inlined_call_operand.vmem [shape: f32[672,196], index: 1, kind: input, shape index: {}]   ;;  %s3313_s2 = inlined_call_operand.vmem [shape: f32[672,196], index: 2, kind: output, shape index: {}]  }
   0x1   :  { %1614 = vset.pattern.permute.xlu1 %v1951_v0  ;;  %1613 = vset.pattern.permute.xlu0 %v1951_v0  ;;  %v13_v1 = vld [vmem:[%s3311_s0 + $0x10] sm:$0xff]  ;;  %v11_v2 = vld [vmem:[%s3311_s0] sm:$0xff]  ;;  %v14_v3 = vld [vmem:[%s3311_s0 + $0x18] sm:$0xff] }
   0x2   :  { %v1530_v4 = vmul.f32 -1.442695, %v13_v1  ;;  %v1528_v5 = vmul.f32 -1.442695, %v11_v2  ;;  %v1531_v6 = vmul.f32 -1.442695, %v14_v3 }
   0x3   :  { %v12_v7 = vld [vmem:[%s3311_s0 + $0x8] sm:$0xff]  ;;  %v15_v9 = vld [vmem:[%s3311_s0 + $0x20] sm:$0xff]  ;;  %v18_v13 = vld [vmem:[%s3311_s0 + $0x38] sm:$0xff] }
   0x4   :  { %v16_v8 = vld [vmem:[%s3311_s0 + $0x28] sm:$0xff]  ;;  %1615 = vpow2.f32 %v1530_v4  ;;  %v1529_v10 = vmul.f32 -1.442695, %v12_v7  ;;  %v1532_v12 = vmul.f32 -1.442695, %v15_v9  ;;  %v17_v14 = vld [vmem:[%s3311_s0 + $0x30] sm:$0xff] }
   0x5   :  { %v1533_v11 = vmul.f32 -1.442695, %v16_v8  ;;  %1617 = vpow2.f32 %v1528_v5  ;;  %v20_v15 = vld [vmem:[%s3311_s0 + $0x48] sm:$0xff]  ;;  %v1535_v16 = vmul.f32 -1.442695, %v18_v13  ;;  %v19_v18 = vld [vmem:[%s3311_s0 + $0x40] sm:$0xff] }
   0x6   :  { %1619 = vpow2.f32 %v1531_v6  ;;  %v1534_v17 = vmul.f32 -1.442695, %v17_v14  ;;  %v22_v19 = vld [vmem:[%s3311_s0 + $0x58] sm:$0xff]  ;;  %v1537_v20 = vmul.f32 -1.442695, %v20_v15  ;;  %v21_v21 = vld [vmem:[%s3311_s0 + $0x50] sm:$0xff] }
   0x7   :  { %1621 = vpow2.f32 %v1529_v10  ;;  %v1536_v22 = vmul.f32 -1.442695, %v19_v18  ;;  %v24_v23 = vld [vmem:[%s3311_s0 + $0x68] sm:$0xff]  ;;  %v1539_v24 = vmul.f32 -1.442695, %v22_v19  ;;  %v23_v46 = vld [vmem:[%s3311_s0 + $0x60] sm:$0xff] }
   0x8   :  { %1623 = vpow2.f32 %v1533_v11  ;;  %v1538_v25 = vmul.f32 -1.442695, %v21_v21  ;;  %v1541_v26 = vmul.f32 -1.442695, %v24_v23  ;;  %v26_v49 = vld [vmem:[%s3311_s0 + $0x78] sm:$0xff]  ;;  %v25_v52 = vld [vmem:[%s3311_s0 + $0x70] sm:$0xff] }
   0x9   :  { %1625 = vpow2.f32 %v1532_v12  ;;  %v1540_v55 = vmul.f32 -1.442695, %v23_v46  ;;  %v28_v56 = vld [vmem:[%s3311_s0 + $0x88] sm:$0xff]  ;;  %v1543_v59 = vmul.f32 -1.442695, %v26_v49  ;;  %v27_v60 = vld [vmem:[%s3311_s0 + $0x80] sm:$0xff] }
   0xa   :  { %1627 = vpow2.f32 %v1535_v16  ;;  %v1542_v62 = vmul.f32 -1.442695, %v25_v52  ;;  %v30_v63 = vld [vmem:[%s3311_s0 + $0x98] sm:$0xff]  ;;  %v1545_v1 = vmul.f32 -1.442695, %v28_v56  ;;  %v29_v2 = vld [vmem:[%s3311_s0 + $0x90] sm:$0xff] }
   0xb   :  { %1629 = vpow2.f32 %v1534_v17  ;;  %v1544_v4 = vmul.f32 -1.442695, %v27_v60  ;;  %v32_v5 = vld [vmem:[%s3311_s0 + $0xa8] sm:$0xff]  ;;  %v1547_v7 = vmul.f32 -1.442695, %v30_v63  ;;  %v31_v8 = vld [vmem:[%s3311_s0 + $0xa0] sm:$0xff] }
   0xc   :  { %1631 = vpow2.f32 %v1537_v20  ;;  %v1546_v10 = vmul.f32 -1.442695, %v29_v2  ;;  %v34_v11 = vld [vmem:[%s3311_s0 + $0xb8] sm:$0xff]  ;;  %v1549_v13 = vmul.f32 -1.442695, %v32_v5  ;;  %v33_v14 = vld [vmem:[%s3311_s0 + $0xb0] sm:$0xff] }
   0xd   :  { %1633 = vpow2.f32 %v1536_v22  ;;  %v1548_v16 = vmul.f32 -1.442695, %v31_v8  ;;  %v36_v17 = vld [vmem:[%s3311_s0 + $0xc8] sm:$0xff]  ;;  %v1551_v19 = vmul.f32 -1.442695, %v34_v11  ;;  %v35_v20 = vld [vmem:[%s3311_s0 + $0xc0] sm:$0xff] }
   0xe   :  { %v1616_v27 = vpop.eup %1615  ;;  %1635 = vpow2.f32 %v1539_v24  ;;  %v1550_v22 = vmul.f32 -1.442695, %v33_v14  ;;  %v1553_v24 = vmul.f32 -1.442695, %v36_v17 }
   0xf   :  { %v1618_v28 = vpop.eup %1617  ;;  %v349_v29 = vadd.f32 1.0, %v1616_v27  ;;  %1637 = vpow2.f32 %v1538_v25 }
  0x10   :  { %v1620_v30 = vpop.eup %1619  ;;  %v347_v31 = vadd.f32 1.0, %v1618_v28  ;;  %1639 = vpow2.f32 %v1541_v26  ;;  %v1552_v26 = vmul.f32 -1.442695, %v35_v20 }
  0x11   :  { %v1622_v32 = vpop.eup %1621  ;;  %1641 = vrcp.f32 %v349_v29  ;;  %v350_v33 = vadd.f32 1.0, %v1620_v30 }
  0x12   :  { %v1624_v34 = vpop.eup %1623  ;;  %1643 = vrcp.f32 %v347_v31  ;;  %v348_v35 = vadd.f32 1.0, %v1622_v32 }
  0x13   :  { %v1626_v36 = vpop.eup %1625  ;;  %1645 = vrcp.f32 %v350_v33  ;;  %v352_v37 = vadd.f32 1.0, %v1624_v34 }
  0x14   :  { %v1628_v38 = vpop.eup %1627  ;;  %1647 = vrcp.f32 %v348_v35  ;;  %v351_v39 = vadd.f32 1.0, %v1626_v36 }
  0x15   :  { %v1630_v40 = vpop.eup %1629  ;;  %1649 = vrcp.f32 %v352_v37  ;;  %v354_v41 = vadd.f32 1.0, %v1628_v38 }
  0x16   :  { %v1632_v42 = vpop.eup %1631  ;;  %1651 = vrcp.f32 %v351_v39  ;;  %v353_v43 = vadd.f32 1.0, %v1630_v40 }
  0x17   :  { %v1634_v44 = vpop.eup %1633  ;;  %1653 = vrcp.f32 %v354_v41  ;;  %v356_v45 = vadd.f32 1.0, %v1632_v42 }
  0x18   :  { %v1636_v47 = vpop.eup %1635  ;;  %1655 = vrcp.f32 %v353_v43  ;;  %v355_v48 = vadd.f32 1.0, %v1634_v44 }
  0x19   :  { %v1638_v50 = vpop.eup %1637  ;;  %1657 = vrcp.f32 %v356_v45  ;;  %v358_v51 = vadd.f32 1.0, %v1636_v47  ;;  %v38_v47 = vld [vmem:[%s3311_s0 + $0xd8] sm:$0xff] }
  0x1a   :  { %v1640_v53 = vpop.eup %1639  ;;  %1659 = vrcp.f32 %v355_v48  ;;  %v357_v54 = vadd.f32 1.0, %v1638_v50  ;;  %v37_v50 = vld [vmem:[%s3311_s0 + $0xd0] sm:$0xff]  ;;  %v1555_v56 = vmul.f32 -1.442695, %v38_v47 }
  0x1b   :  { %v1642_v57 = vpop.eup %1641  ;;  %1661 = vrcp.f32 %v358_v51  ;;  %v360_v58 = vadd.f32 1.0, %v1640_v53  ;;  %v40_v53 = vld [vmem:[%s3311_s0 + $0xe8] sm:$0xff]  ;;  %v1554_v60 = vmul.f32 -1.442695, %v37_v50 }
  0x1c   :  { %v1644_v61 = vpop.eup %1643  ;;  %779 = vperm.xlu1 %1614, %v1642_v57   ;;  %1663 = vrcp.f32 %v357_v54  ;;  %v39_v57 = vld [vmem:[%s3311_s0 + $0xe0] sm:$0xff]  ;;  %v1557_v63 = vmul.f32 -1.442695, %v40_v53 }
  0x1d   :  { %v1646_v0 = vpop.eup %1645  ;;  %769 = vperm.xlu0 %1613, %v1644_v61   ;;  %1665 = vrcp.f32 %v360_v58  ;;  %v42_v61 = vld [vmem:[%s3311_s0 + $0xf8] sm:$0xff]  ;;  %v1556_v2 = vmul.f32 -1.442695, %v39_v57 }
  0x1e   :  { %v1648_v3 = vpop.eup %1647  ;;  %1667 = vpow2.f32 %v1540_v55  ;;  %v1559_v5 = vmul.f32 -1.442695, %v42_v61 }
  0x1f   :  { %v1650_v6 = vpop.eup %1649  ;;  %1669 = vpow2.f32 %v1543_v59 }
  0x20   :  { %v1652_v9 = vpop.eup %1651  ;;  %784 = vperm.xlu1 %1614, %v1646_v0   ;;  %1671 = vpow2.f32 %v1542_v62  ;;  %v41_v0 = vld [vmem:[%s3311_s0 + $0xf0] sm:$0xff] }
  0x21   :  { %v1654_v12 = vpop.eup %1653  ;;  %774 = vperm.xlu0 %1613, %v1648_v3   ;;  %1673 = vpow2.f32 %v1545_v1  ;;  %v44_v3 = vld [vmem:[%s3311_s0 + $0x108] sm:$0xff]  ;;  %v1558_v8 = vmul.f32 -1.442695, %v41_v0 }
  0x22   :  { %v1656_v15 = vpop.eup %1655  ;;  %1675 = vpow2.f32 %v1544_v4  ;;  %v1561_v11 = vmul.f32 -1.442695, %v44_v3 }
  0x23   :  { %v1658_v18 = vpop.eup %1657  ;;  %1677 = vpow2.f32 %v1547_v7 }
  0x24   :  { %v1660_v21 = vpop.eup %1659  ;;  %794 = vperm.xlu1 %1614, %v1650_v6   ;;  %1679 = vpow2.f32 %v1546_v10  ;;  %v43_v6 = vld [vmem:[%s3311_s0 + $0x100] sm:$0xff] }
  0x25   :  { %v1662_v23 = vpop.eup %1661  ;;  %789 = vperm.xlu0 %1613, %v1652_v9   ;;  %1681 = vpow2.f32 %v1549_v13  ;;  %v46_v9 = vld [vmem:[%s3311_s0 + $0x118] sm:$0xff]  ;;  %v1560_v14 = vmul.f32 -1.442695, %v43_v6 }
  0x26   :  { %v1664_v25 = vpop.eup %1663  ;;  %1683 = vpow2.f32 %v1548_v16  ;;  %v1563_v17 = vmul.f32 -1.442695, %v46_v9 }
  0x27   :  { %v1666_v27 = vpop.eup %1665  ;;  %1685 = vpow2.f32 %v1551_v19 }
  0x28   :  { %v1668_v28 = vpop.eup %1667  ;;  %804 = vperm.xlu1 %1614, %v1654_v12   ;;  %1687 = vpow2.f32 %v1550_v22  ;;  %v45_v12 = vld [vmem:[%s3311_s0 + $0x110] sm:$0xff] }
  0x29   :  { %v1670_v29 = vpop.eup %1669  ;;  %799 = vperm.xlu0 %1613, %v1656_v15   ;;  %v359_v30 = vadd.f32 1.0, %v1668_v28  ;;  %1689 = vpow2.f32 %v1553_v24  ;;  %v48_v15 = vld [vmem:[%s3311_s0 + $0x128] sm:$0xff]  ;;  %v1562_v20 = vmul.f32 -1.442695, %v45_v12 }
  0x2a   :  { %v1672_v31 = vpop.eup %1671  ;;  %v362_v32 = vadd.f32 1.0, %v1670_v29  ;;  %1691 = vpow2.f32 %v1552_v26 }
  0x2b   :  { %v1674_v33 = vpop.eup %1673  ;;  %1693 = vrcp.f32 %v359_v30  ;;  %v361_v34 = vadd.f32 1.0, %v1672_v31 }
  0x2c   :  { %v1676_v35 = vpop.eup %1675  ;;  %814 = vperm.xlu1 %1614, %v1658_v18   ;;  %1695 = vrcp.f32 %v362_v32  ;;  %v364_v36 = vadd.f32 1.0, %v1674_v33  ;;  %v47_v18 = vld [vmem:[%s3311_s0 + $0x120] sm:$0xff] }
  0x2d   :  { %v1678_v37 = vpop.eup %1677  ;;  %809 = vperm.xlu0 %1613, %v1660_v21   ;;  %1697 = vrcp.f32 %v361_v34  ;;  %v363_v38 = vadd.f32 1.0, %v1676_v35  ;;  %v50_v21 = vld [vmem:[%s3311_s0 + $0x138] sm:$0xff] }
  0x2e   :  { %v1680_v39 = vpop.eup %1679  ;;  %1699 = vrcp.f32 %v364_v36  ;;  %v366_v40 = vadd.f32 1.0, %v1678_v37 }
  0x2f   :  { %v1682_v41 = vpop.eup %1681  ;;  %1701 = vrcp.f32 %v363_v38  ;;  %v365_v42 = vadd.f32 1.0, %v1680_v39 }
  0x30   :  { %v1684_v43 = vpop.eup %1683  ;;  %824 = vperm.xlu1 %1614, %v1662_v23   ;;  %1703 = vrcp.f32 %v366_v40  ;;  %v368_v44 = vadd.f32 1.0, %v1682_v41  ;;  %v1565_v23 = vmul.f32 -1.442695, %v48_v15 }
  0x31   :  { %v1686_v45 = vpop.eup %1685  ;;  %819 = vperm.xlu0 %1613, %v1664_v25   ;;  %1705 = vrcp.f32 %v365_v42  ;;  %v367_v46 = vadd.f32 1.0, %v1684_v43  ;;  %v1564_v25 = vmul.f32 -1.442695, %v47_v18 }
  0x32   :  { %v1688_v48 = vpop.eup %1687  ;;  %1707 = vrcp.f32 %v368_v44  ;;  %v370_v49 = vadd.f32 1.0, %v1686_v45 }
  0x33   :  { %v1690_v51 = vpop.eup %1689  ;;  %1709 = vrcp.f32 %v367_v46  ;;  %v369_v52 = vadd.f32 1.0, %v1688_v48  ;;  %v49_v48 = vld [vmem:[%s3311_s0 + $0x130] sm:$0xff] }
  0x34   :  { %v1692_v54 = vpop.eup %1691  ;;  %834 = vperm.xlu1 %1614, %v1666_v27   ;;  %1711 = vrcp.f32 %v370_v49  ;;  %v372_v55 = vadd.f32 1.0, %v1690_v51  ;;  %v1567_v27 = vmul.f32 -1.442695, %v50_v21  ;;  %v52_v51 = vld [vmem:[%s3311_s0 + $0x148] sm:$0xff]  ;;  %v1566_v57 = vmul.f32 -1.442695, %v49_v48 }
  0x35   :  { %v1694_v58 = vpop.eup %1693  ;;  %1713 = vrcp.f32 %v369_v52  ;;  %v371_v59 = vadd.f32 1.0, %v1692_v54  ;;  %v51_v54 = vld [vmem:[%s3311_s0 + $0x140] sm:$0xff]  ;;  %v1569_v61 = vmul.f32 -1.442695, %v52_v51 }
  0x36   :  { %v1696_v62 = vpop.eup %1695  ;;  %829 = vperm.xlu0 %1613, %v1694_v58   ;;  %1715 = vrcp.f32 %v372_v55  ;;  %v54_v58 = vld [vmem:[%s3311_s0 + $0x158] sm:$0xff]  ;;  %v1568_v0 = vmul.f32 -1.442695, %v51_v54 }
  0x37   :  { %v1698_v1 = vpop.eup %1697  ;;  %1717 = vrcp.f32 %v371_v59  ;;  %v1571_v3 = vmul.f32 -1.442695, %v54_v58 }
  0x38   :  { %v1700_v4 = vpop.eup %1699  ;;  %844 = vperm.xlu1 %1614, %v1696_v62   ;;  %1719 = vpow2.f32 %v1555_v56  ;;  %v53_v62 = vld [vmem:[%s3311_s0 + $0x150] sm:$0xff] }
  0x39   :  { %v1702_v7 = vpop.eup %1701  ;;  %1721 = vpow2.f32 %v1554_v60  ;;  %v1570_v6 = vmul.f32 -1.442695, %v53_v62 }
  0x3a   :  { %v1704_v10 = vpop.eup %1703  ;;  %839 = vperm.xlu0 %1613, %v1698_v1   ;;  %1723 = vpow2.f32 %v1557_v63  ;;  %v56_v1 = vld [vmem:[%s3311_s0 + $0x168] sm:$0xff] }
  0x3b   :  { %v1706_v13 = vpop.eup %1705  ;;  %1725 = vpow2.f32 %v1556_v2  ;;  %v1573_v9 = vmul.f32 -1.442695, %v56_v1 }
  0x3c   :  { %v1708_v16 = vpop.eup %1707  ;;  %854 = vperm.xlu1 %1614, %v1700_v4   ;;  %1727 = vpow2.f32 %v1559_v5  ;;  %v55_v4 = vld [vmem:[%s3311_s0 + $0x160] sm:$0xff] }
  0x3d   :  { %v1710_v19 = vpop.eup %1709  ;;  %1729 = vpow2.f32 %v1558_v8  ;;  %v1572_v12 = vmul.f32 -1.442695, %v55_v4 }
  0x3e   :  { %v1712_v22 = vpop.eup %1711  ;;  %849 = vperm.xlu0 %1613, %v1702_v7   ;;  %1731 = vpow2.f32 %v1561_v11  ;;  %v58_v7 = vld [vmem:[%s3311_s0 + $0x178] sm:$0xff] }
  0x3f   :  { %v1714_v24 = vpop.eup %1713  ;;  %1733 = vpow2.f32 %v1560_v14  ;;  %v1575_v15 = vmul.f32 -1.442695, %v58_v7 }
  0x40   :  { %v1716_v26 = vpop.eup %1715  ;;  %864 = vperm.xlu1 %1614, %v1704_v10   ;;  %1735 = vpow2.f32 %v1563_v17  ;;  %v57_v10 = vld [vmem:[%s3311_s0 + $0x170] sm:$0xff] }
  0x41   :  { %v1718_v28 = vpop.eup %1717  ;;  %1737 = vpow2.f32 %v1562_v20  ;;  %v1574_v18 = vmul.f32 -1.442695, %v57_v10 }
  0x42   :  { %v1720_v29 = vpop.eup %1719  ;;  %859 = vperm.xlu0 %1613, %v1706_v13   ;;  %1739 = vpow2.f32 %v1565_v23  ;;  %v60_v13 = vld [vmem:[%s3311_s0 + $0x188] sm:$0xff] }
  0x43   :  { %v1722_v30 = vpop.eup %1721  ;;  %v374_v31 = vadd.f32 1.0, %v1720_v29  ;;  %1741 = vpow2.f32 %v1564_v25  ;;  %v1577_v21 = vmul.f32 -1.442695, %v60_v13 }
  0x44   :  { %v1724_v32 = vpop.eup %1723  ;;  %874 = vperm.xlu1 %1614, %v1708_v16   ;;  %v373_v33 = vadd.f32 1.0, %v1722_v30  ;;  %1743 = vpow2.f32 %v1567_v27  ;;  %v59_v16 = vld [vmem:[%s3311_s0 + $0x180] sm:$0xff] }
  0x45   :  { %v1726_v34 = vpop.eup %1725  ;;  %1745 = vrcp.f32 %v374_v31  ;;  %v376_v35 = vadd.f32 1.0, %v1724_v32 }
  0x46   :  { %v1728_v36 = vpop.eup %1727  ;;  %869 = vperm.xlu0 %1613, %v1710_v19   ;;  %1747 = vrcp.f32 %v373_v33  ;;  %v375_v37 = vadd.f32 1.0, %v1726_v34  ;;  %v62_v19 = vld [vmem:[%s3311_s0 + $0x198] sm:$0xff] }
  0x47   :  { %v1730_v38 = vpop.eup %1729  ;;  %1749 = vrcp.f32 %v376_v35  ;;  %v378_v39 = vadd.f32 1.0, %v1728_v36 }
  0x48   :  { %v1732_v40 = vpop.eup %1731  ;;  %884 = vperm.xlu1 %1614, %v1712_v22   ;;  %1751 = vrcp.f32 %v375_v37  ;;  %v377_v41 = vadd.f32 1.0, %v1730_v38  ;;  %v61_v22 = vld [vmem:[%s3311_s0 + $0x190] sm:$0xff] }
  0x49   :  { %v1734_v42 = vpop.eup %1733  ;;  %1753 = vrcp.f32 %v378_v39  ;;  %v380_v43 = vadd.f32 1.0, %v1732_v40 }
  0x4a   :  { %v1736_v44 = vpop.eup %1735  ;;  %879 = vperm.xlu0 %1613, %v1714_v24   ;;  %1755 = vrcp.f32 %v377_v41  ;;  %v379_v45 = vadd.f32 1.0, %v1734_v42  ;;  %v1576_v24 = vmul.f32 -1.442695, %v59_v16 }
  0x4b   :  { %v1738_v46 = vpop.eup %1737  ;;  %1757 = vrcp.f32 %v380_v43  ;;  %v382_v47 = vadd.f32 1.0, %v1736_v44 }
  0x4c   :  { %v1740_v49 = vpop.eup %1739  ;;  %894 = vperm.xlu1 %1614, %v1716_v26   ;;  %1759 = vrcp.f32 %v379_v45  ;;  %v381_v50 = vadd.f32 1.0, %v1738_v46  ;;  %v1579_v26 = vmul.f32 -1.442695, %v62_v19 }
  0x4d   :  { %v1742_v52 = vpop.eup %1741  ;;  %1761 = vrcp.f32 %v382_v47  ;;  %v384_v53 = vadd.f32 1.0, %v1740_v49  ;;  %v64_v49 = vld [vmem:[%s3311_s0 + $0x1a8] sm:$0xff] }
  0x4e   :  { %v1744_v55 = vpop.eup %1743  ;;  %889 = vperm.xlu0 %1613, %v1718_v28   ;;  %1763 = vrcp.f32 %v381_v50  ;;  %v383_v56 = vadd.f32 1.0, %v1742_v52  ;;  %v1578_v28 = vmul.f32 -1.442695, %v61_v22  ;;  %v63_v52 = vld [vmem:[%s3311_s0 + $0x1a0] sm:$0xff]  ;;  %v1581_v58 = vmul.f32 -1.442695, %v64_v49 }
  0x4f   :  { %v1746_v59 = vpop.eup %1745  ;;  %1765 = vrcp.f32 %v384_v53  ;;  %v386_v60 = vadd.f32 1.0, %v1744_v55  ;;  %v66_v55 = vld [vmem:[%s3311_s0 + $0x1b8] sm:$0xff]  ;;  %v1580_v62 = vmul.f32 -1.442695, %v63_v52 }
  0x50   :  { %v1748_v63 = vpop.eup %1747  ;;  %904 = vperm.xlu1 %1614, %v1746_v59   ;;  %1767 = vrcp.f32 %v383_v56  ;;  %v65_v59 = vld [vmem:[%s3311_s0 + $0x1b0] sm:$0xff]  ;;  %v1583_v1 = vmul.f32 -1.442695, %v66_v55 }
  0x51   :  { %v1750_v2 = vpop.eup %1749  ;;  %1769 = vrcp.f32 %v386_v60  ;;  %v1582_v4 = vmul.f32 -1.442695, %v65_v59 }
  0x52   :  { %v1752_v5 = vpop.eup %1751  ;;  %899 = vperm.xlu0 %1613, %v1748_v63   ;;  %1771 = vpow2.f32 %v1566_v57  ;;  %v68_v63 = vld [vmem:[%s3311_s0 + $0x1c8] sm:$0xff] }
  0x53   :  { %v1754_v8 = vpop.eup %1753  ;;  %1773 = vpow2.f32 %v1569_v61  ;;  %v1585_v7 = vmul.f32 -1.442695, %v68_v63 }
  0x54   :  { %v1756_v11 = vpop.eup %1755  ;;  %914 = vperm.xlu1 %1614, %v1750_v2   ;;  %1775 = vpow2.f32 %v1568_v0  ;;  %v67_v2 = vld [vmem:[%s3311_s0 + $0x1c0] sm:$0xff] }
  0x55   :  { %v1758_v14 = vpop.eup %1757  ;;  %1777 = vpow2.f32 %v1571_v3  ;;  %v1584_v10 = vmul.f32 -1.442695, %v67_v2 }
  0x56   :  { %v1760_v17 = vpop.eup %1759  ;;  %909 = vperm.xlu0 %1613, %v1752_v5   ;;  %1779 = vpow2.f32 %v1570_v6  ;;  %v70_v5 = vld [vmem:[%s3311_s0 + $0x1d8] sm:$0xff] }
  0x57   :  { %v1762_v20 = vpop.eup %1761  ;;  %1781 = vpow2.f32 %v1573_v9  ;;  %v1587_v13 = vmul.f32 -1.442695, %v70_v5 }
  0x58   :  { %v1764_v23 = vpop.eup %1763  ;;  %924 = vperm.xlu1 %1614, %v1754_v8   ;;  %1783 = vpow2.f32 %v1572_v12  ;;  %v69_v8 = vld [vmem:[%s3311_s0 + $0x1d0] sm:$0xff] }
  0x59   :  { %v1766_v25 = vpop.eup %1765  ;;  %1785 = vpow2.f32 %v1575_v15  ;;  %v1586_v16 = vmul.f32 -1.442695, %v69_v8 }
  0x5a   :  { %v1768_v27 = vpop.eup %1767  ;;  %919 = vperm.xlu0 %1613, %v1756_v11   ;;  %1787 = vpow2.f32 %v1574_v18  ;;  %v72_v11 = vld [vmem:[%s3311_s0 + $0x1e8] sm:$0xff] }
  0x5b   :  { %v1770_v29 = vpop.eup %1769  ;;  %1789 = vpow2.f32 %v1577_v21  ;;  %v1589_v19 = vmul.f32 -1.442695, %v72_v11 }
  0x5c   :  { %v1772_v30 = vpop.eup %1771  ;;  %934 = vperm.xlu1 %1614, %v1758_v14   ;;  %1791 = vpow2.f32 %v1576_v24  ;;  %v71_v14 = vld [vmem:[%s3311_s0 + $0x1e0] sm:$0xff] }
  0x5d   :  { %v1774_v31 = vpop.eup %1773  ;;  %v385_v32 = vadd.f32 1.0, %v1772_v30  ;;  %1793 = vpow2.f32 %v1579_v26  ;;  %v1588_v22 = vmul.f32 -1.442695, %v71_v14 }
  0x5e   :  { %v1776_v33 = vpop.eup %1775  ;;  %929 = vperm.xlu0 %1613, %v1760_v17   ;;  %v388_v34 = vadd.f32 1.0, %v1774_v31  ;;  %1795 = vpow2.f32 %v1578_v28  ;;  %v74_v17 = vld [vmem:[%s3311_s0 + $0x1f8] sm:$0xff] }
  0x5f   :  { %v1778_v35 = vpop.eup %1777  ;;  %1797 = vrcp.f32 %v385_v32  ;;  %v387_v36 = vadd.f32 1.0, %v1776_v33 }
  0x60   :  { %v1780_v37 = vpop.eup %1779  ;;  %944 = vperm.xlu1 %1614, %v1762_v20   ;;  %1799 = vrcp.f32 %v388_v34  ;;  %v390_v38 = vadd.f32 1.0, %v1778_v35  ;;  %v73_v20 = vld [vmem:[%s3311_s0 + $0x1f0] sm:$0xff] }
  0x61   :  { %v1782_v39 = vpop.eup %1781  ;;  %1801 = vrcp.f32 %v387_v36  ;;  %v389_v40 = vadd.f32 1.0, %v1780_v37 }
  0x62   :  { %v1784_v41 = vpop.eup %1783  ;;  %939 = vperm.xlu0 %1613, %v1764_v23   ;;  %1803 = vrcp.f32 %v390_v38  ;;  %v392_v42 = vadd.f32 1.0, %v1782_v39  ;;  %v76_v23 = vld [vmem:[%s3311_s0 + $0x208] sm:$0xff] }
  0x63   :  { %v1786_v43 = vpop.eup %1785  ;;  %1805 = vrcp.f32 %v389_v40  ;;  %v391_v44 = vadd.f32 1.0, %v1784_v41 }
  0x64   :  { %v1788_v45 = vpop.eup %1787  ;;  %954 = vperm.xlu1 %1614, %v1766_v25   ;;  %1807 = vrcp.f32 %v392_v42  ;;  %v394_v46 = vadd.f32 1.0, %v1786_v43  ;;  %v1591_v25 = vmul.f32 -1.442695, %v74_v17 }
  0x65   :  { %v1790_v47 = vpop.eup %1789  ;;  %1809 = vrcp.f32 %v391_v44  ;;  %v393_v48 = vadd.f32 1.0, %v1788_v45 }
  0x66   :  { %v1792_v50 = vpop.eup %1791  ;;  %949 = vperm.xlu0 %1613, %v1768_v27   ;;  %1811 = vrcp.f32 %v394_v46  ;;  %v396_v51 = vadd.f32 1.0, %v1790_v47  ;;  %v1590_v27 = vmul.f32 -1.442695, %v73_v20 }
  0x67   :  { %v1794_v53 = vpop.eup %1793  ;;  %1813 = vrcp.f32 %v393_v48  ;;  %v395_v54 = vadd.f32 1.0, %v1792_v50  ;;  %v75_v50 = vld [vmem:[%s3311_s0 + $0x200] sm:$0xff] }
  0x68   :  { %v1796_v56 = vpop.eup %1795  ;;  %964 = vperm.xlu1 %1614, %v1770_v29   ;;  %1815 = vrcp.f32 %v396_v51  ;;  %v398_v57 = vadd.f32 1.0, %v1794_v53  ;;  %v1593_v29 = vmul.f32 -1.442695, %v76_v23  ;;  %v78_v53 = vld [vmem:[%s3311_s0 + $0x218] sm:$0xff]  ;;  %v1592_v59 = vmul.f32 -1.442695, %v75_v50 }
  0x69   :  { %v1798_v60 = vpop.eup %1797  ;;  %1817 = vrcp.f32 %v395_v54  ;;  %v397_v61 = vadd.f32 1.0, %v1796_v56  ;;  %v77_v56 = vld [vmem:[%s3311_s0 + $0x210] sm:$0xff]  ;;  %v1595_v63 = vmul.f32 -1.442695, %v78_v53  ;;  %v603_v50 = vld [vmem:[%s3312_s1 + $0x20] sm:$0xff]  ;;  %v90_v53 = vld [vmem:[%s3311_s0 + $0x278] sm:$0xff] }
  0x6a   :  { %v1800_v0 = vpop.eup %1799  ;;  %959 = vperm.xlu0 %1613, %v1798_v60   ;;  %1819 = vrcp.f32 %v398_v57  ;;  %v80_v60 = vld [vmem:[%s3311_s0 + $0x228] sm:$0xff]  ;;  %v1594_v2 = vmul.f32 -1.442695, %v77_v56 }
  0x6b   :  { %v1802_v3 = vpop.eup %1801  ;;  %1821 = vrcp.f32 %v397_v61  ;;  %v1597_v5 = vmul.f32 -1.442695, %v80_v60  ;;  %v600_v56 = vld [vmem:[%s3312_s1 + $0x8] sm:$0xff] }
  0x6c   :  { %v1804_v6 = vpop.eup %1803  ;;  %974 = vperm.xlu1 %1614, %v1800_v0   ;;  %1823 = vpow2.f32 %v1581_v58  ;;  %v79_v0 = vld [vmem:[%s3311_s0 + $0x220] sm:$0xff] }
  0x6d   :  { %v1806_v9 = vpop.eup %1805  ;;  %1825 = vpow2.f32 %v1580_v62  ;;  %v1596_v8 = vmul.f32 -1.442695, %v79_v0 }
  0x6e   :  { %v1808_v12 = vpop.eup %1807  ;;  %969 = vperm.xlu0 %1613, %v1802_v3   ;;  %1827 = vpow2.f32 %v1583_v1  ;;  %v82_v3 = vld [vmem:[%s3311_s0 + $0x238] sm:$0xff] }
  0x6f   :  { %v1810_v15 = vpop.eup %1809  ;;  %1829 = vpow2.f32 %v1582_v4  ;;  %v1599_v11 = vmul.f32 -1.442695, %v82_v3 }
  0x70   :  { %v1812_v18 = vpop.eup %1811  ;;  %984 = vperm.xlu1 %1614, %v1804_v6   ;;  %1831 = vpow2.f32 %v1585_v7  ;;  %v81_v6 = vld [vmem:[%s3311_s0 + $0x230] sm:$0xff] }
  0x71   :  { %v1814_v21 = vpop.eup %1813  ;;  %1833 = vpow2.f32 %v1584_v10  ;;  %v1598_v14 = vmul.f32 -1.442695, %v81_v6  ;;  %v605_v6 = vld [vmem:[%s3312_s1 + $0x30] sm:$0xff] }
  0x72   :  { %v1816_v24 = vpop.eup %1815  ;;  %979 = vperm.xlu0 %1613, %v1806_v9   ;;  %1835 = vpow2.f32 %v1587_v13  ;;  %v84_v9 = vld [vmem:[%s3311_s0 + $0x248] sm:$0xff] }
  0x73   :  { %v1818_v26 = vpop.eup %1817  ;;  %1837 = vpow2.f32 %v1586_v16  ;;  %v1601_v17 = vmul.f32 -1.442695, %v84_v9  ;;  %v94_v9 = vld [vmem:[%s3311_s0 + $0x298] sm:$0xff] }
  0x74   :  { %v1820_v28 = vpop.eup %1819  ;;  %994 = vperm.xlu1 %1614, %v1808_v12   ;;  %1839 = vpow2.f32 %v1589_v19  ;;  %v83_v12 = vld [vmem:[%s3311_s0 + $0x240] sm:$0xff] }
  0x75   :  { %v1822_v30 = vpop.eup %1821  ;;  %1841 = vpow2.f32 %v1588_v22  ;;  %v1600_v20 = vmul.f32 -1.442695, %v83_v12  ;;  %v602_v12 = vld [vmem:[%s3312_s1 + $0x18] sm:$0xff] }
  0x76   :  { %v1824_v31 = vpop.eup %1823  ;;  %989 = vperm.xlu0 %1613, %v1810_v15   ;;  %1843 = vpow2.f32 %v1591_v25  ;;  %v86_v15 = vld [vmem:[%s3311_s0 + $0x258] sm:$0xff] }
  0x77   :  { %v1826_v32 = vpop.eup %1825  ;;  %v400_v33 = vadd.f32 1.0, %v1824_v31  ;;  %1845 = vpow2.f32 %v1590_v27  ;;  %v1603_v22 = vmul.f32 -1.442695, %v86_v15 }
  0x78   :  { %v1828_v34 = vpop.eup %1827  ;;  %1004 = vperm.xlu1 %1614, %v1812_v18   ;;  %v399_v35 = vadd.f32 1.0, %v1826_v32  ;;  %1847 = vpow2.f32 %v1593_v29  ;;  %v85_v18 = vld [vmem:[%s3311_s0 + $0x250] sm:$0xff]  ;;  %v87_v32 = vld [vmem:[%s3311_s0 + $0x260] sm:$0xff] }
  0x79   :  { %v1830_v36 = vpop.eup %1829  ;;  %1849 = vrcp.f32 %v400_v33  ;;  %v402_v37 = vadd.f32 1.0, %v1828_v34 }
  0x7a   :  { %v1832_v38 = vpop.eup %1831  ;;  %999 = vperm.xlu0 %1613, %v1814_v21   ;;  %1851 = vrcp.f32 %v399_v35  ;;  %v401_v39 = vadd.f32 1.0, %v1830_v36 }
  0x7b   :  { %v1834_v40 = vpop.eup %1833  ;;  %1853 = vrcp.f32 %v402_v37  ;;  %v404_v41 = vadd.f32 1.0, %v1832_v38 }
  0x7c   :  { %v1836_v42 = vpop.eup %1835  ;;  %1014 = vperm.xlu1 %1614, %v1816_v24   ;;  %1855 = vrcp.f32 %v401_v39  ;;  %v403_v43 = vadd.f32 1.0, %v1834_v40  ;;  %v1602_v24 = vmul.f32 -1.442695, %v85_v18  ;;  %v1604_v40 = vmul.f32 -1.442695, %v87_v32 }
  0x7d   :  { %v1838_v44 = vpop.eup %1837  ;;  %1857 = vrcp.f32 %v404_v41  ;;  %v406_v45 = vadd.f32 1.0, %v1836_v42 }
  0x7e   :  { %v1840_v46 = vpop.eup %1839  ;;  %1009 = vperm.xlu0 %1613, %v1818_v26   ;;  %1859 = vrcp.f32 %v403_v43  ;;  %v405_v47 = vadd.f32 1.0, %v1838_v44 }
  0x7f   :  { %v1842_v48 = vpop.eup %1841  ;;  %1861 = vrcp.f32 %v406_v45  ;;  %v408_v49 = vadd.f32 1.0, %v1840_v46 }
  0x80   :  { %v1844_v51 = vpop.eup %1843  ;;  %1024 = vperm.xlu1 %1614, %v1820_v28   ;;  %1863 = vrcp.f32 %v405_v47  ;;  %v407_v52 = vadd.f32 1.0, %v1842_v48  ;;  %v88_v28 = vld [vmem:[%s3311_s0 + $0x268] sm:$0xff] }
  0x81   :  { %v1846_v54 = vpop.eup %1845  ;;  %1865 = vrcp.f32 %v408_v49  ;;  %v410_v55 = vadd.f32 1.0, %v1844_v51  ;;  %v1605_v35 = vmul.f32 -1.442695, %v88_v28  ;;  %v604_v51 = vld [vmem:[%s3312_s1 + $0x28] sm:$0xff] }
  0x82   :  { %v1848_v57 = vpop.eup %1847  ;;  %1019 = vperm.xlu0 %1613, %v1822_v30   ;;  %1867 = vrcp.f32 %v407_v52  ;;  %v409_v58 = vadd.f32 1.0, %v1846_v54 }
  0x83   :  { %v1850_v61 = vpop.eup %1849  ;;  %1869 = vrcp.f32 %v410_v55  ;;  %v412_v62 = vadd.f32 1.0, %v1848_v57  ;;  %v599_v55 = vld [vmem:[%s3312_s1] sm:$0xff] }
  0x84   :  { %v1852_v1 = vpop.eup %1851  ;;  %1034 = vperm.xlu1 %1614, %v1850_v61   ;;  %1871 = vrcp.f32 %v409_v58  ;;  %v89_v58 = vld [vmem:[%s3311_s0 + $0x270] sm:$0xff]  ;;  %v92_v61 = vld [vmem:[%s3311_s0 + $0x288] sm:$0xff] }
  0x85   :  { %v1854_v4 = vpop.eup %1853  ;;  %1873 = vrcp.f32 %v412_v62 }
  0x86   :  { %v1856_v7 = vpop.eup %1855  ;;  %1029 = vperm.xlu0 %1613, %v1852_v1   ;;  %1875 = vpow2.f32 %v1592_v59  ;;  %v1607_v1 = vmul.f32 -1.442695, %v90_v53 }
  0x87   :  { %v1858_v10 = vpop.eup %1857  ;;  %1877 = vpow2.f32 %v1595_v63 }
  0x88   :  { %v1860_v13 = vpop.eup %1859  ;;  %1044 = vperm.xlu1 %1614, %v1854_v4   ;;  %1879 = vpow2.f32 %v1594_v2  ;;  %v91_v2 = vld [vmem:[%s3311_s0 + $0x280] sm:$0xff] }
  0x89   :  { %v1862_v16 = vpop.eup %1861  ;;  %1881 = vpow2.f32 %v1597_v5 }
  0x8a   :  { %v1864_v19 = vpop.eup %1863  ;;  %1039 = vperm.xlu0 %1613, %v1856_v7   ;;  %1883 = vpow2.f32 %v1596_v8  ;;  %v606_v7 = vld [vmem:[%s3312_s1 + $0x38] sm:$0xff]  ;;  %v1606_v8 = vmul.f32 -1.442695, %v89_v58 }
  0x8b   :  { %v1866_v21 = vpop.eup %1865  ;;  %1885 = vpow2.f32 %v1599_v11  ;;  %v601_v11 = vld [vmem:[%s3312_s1 + $0x10] sm:$0xff]  ;;  %v618_v58 = vld [vmem:[%s3312_s1 + $0x98] sm:$0xff] }
  0x8c   :  { %v1868_v23 = vpop.eup %1867  ;;  %1054 = vperm.xlu1 %1614, %v1858_v10   ;;  %1887 = vpow2.f32 %v1598_v14  ;;  %v93_v14 = vld [vmem:[%s3311_s0 + $0x290] sm:$0xff] }
  0x8d   :  { %v1870_v25 = vpop.eup %1869  ;;  %1889 = vpow2.f32 %v1601_v17  ;;  %v1608_v17 = vmul.f32 -1.442695, %v91_v2  ;;  %v1610_v28 = vmul.f32 -1.442695, %v93_v14  ;;  %v620_v14 = vld [vmem:[%s3312_s1 + $0xa8] sm:$0xff] }
  0x8e   :  { %v1872_v26 = vpop.eup %1871  ;;  %1049 = vperm.xlu0 %1613, %v1860_v13   ;;  %1891 = vpow2.f32 %v1600_v20  ;;  %v1609_v13 = vmul.f32 -1.442695, %v92_v61  ;;  %v616_v61 = vld [vmem:[%s3312_s1 + $0x88] sm:$0xff] }
  0x8f   :  { %v1874_v27 = vpop.eup %1873  ;;  %1893 = vpow2.f32 %v1603_v22  ;;  %v1611_v22 = vmul.f32 -1.442695, %v94_v9  ;;  %v621_v9 = vld [vmem:[%s3312_s1 + $0xb0] sm:$0xff] }
  0x90   :  { %v1876_v29 = vpop.eup %1875  ;;  %1064 = vperm.xlu1 %1614, %v1862_v16   ;;  %1895 = vpow2.f32 %v1602_v24 }
  0x91   :  { %v1878_v30 = vpop.eup %1877  ;;  %v411_v31 = vadd.f32 1.0, %v1876_v29 }
  0x92   :  { %v1880_v33 = vpop.eup %1879  ;;  %1059 = vperm.xlu0 %1613, %v1864_v19   ;;  %v414_v34 = vadd.f32 1.0, %v1878_v30  ;;  %v607_v30 = vld [vmem:[%s3312_s1 + $0x40] sm:$0xff] }
  0x93   :  { %v1882_v36 = vpop.eup %1881  ;;  %1897 = vrcp.f32 %v411_v31  ;;  %v413_v37 = vadd.f32 1.0, %v1880_v33  ;;  %v608_v31 = vld [vmem:[%s3312_s1 + $0x48] sm:$0xff] }
  0x94   :  { %v1884_v38 = vpop.eup %1883  ;;  %1074 = vperm.xlu1 %1614, %v1866_v21   ;;  %1899 = vrcp.f32 %v414_v34  ;;  %v416_v39 = vadd.f32 1.0, %v1882_v36 }
  0x95   :  { %v1886_v41 = vpop.eup %1885  ;;  %1901 = vrcp.f32 %v413_v37  ;;  %v415_v42 = vadd.f32 1.0, %v1884_v38 }
  0x96   :  { %v1888_v43 = vpop.eup %1887  ;;  %1069 = vperm.xlu0 %1613, %v1868_v23   ;;  %v418_v44 = vadd.f32 1.0, %v1886_v41  ;;  %1903 = vpow2.f32 %v1605_v35 }
  0x97   :  { %v1890_v45 = vpop.eup %1889  ;;  %1905 = vrcp.f32 %v416_v39  ;;  %v417_v46 = vadd.f32 1.0, %v1888_v43  ;;  %v614_v43 = vld [vmem:[%s3312_s1 + $0x78] sm:$0xff] }
  0x98   :  { %v1892_v47 = vpop.eup %1891  ;;  %1084 = vperm.xlu1 %1614, %v1870_v25   ;;  %v420_v48 = vadd.f32 1.0, %v1890_v45  ;;  %1907 = vpow2.f32 %v1604_v40 }
  0x99   :  { %v1894_v49 = vpop.eup %1893  ;;  %1909 = vrcp.f32 %v415_v42  ;;  %v419_v52 = vadd.f32 1.0, %v1892_v47  ;;  %v613_v42 = vld [vmem:[%s3312_s1 + $0x70] sm:$0xff]  ;;  %v612_v47 = vld [vmem:[%s3312_s1 + $0x68] sm:$0xff] }
  0x9a   :  { %v1896_v54 = vpop.eup %1895  ;;  %1079 = vperm.xlu0 %1613, %v1872_v26   ;;  %1911 = vrcp.f32 %v418_v44  ;;  %v422_v57 = vadd.f32 1.0, %v1894_v49  ;;  %v609_v26 = vld [vmem:[%s3312_s1 + $0x50] sm:$0xff] }
  0x9b   :  { %v780_v59 = vpop.permute.xlu1 %779  ;;  %1913 = vrcp.f32 %v417_v46  ;;  %v421_v60 = vadd.f32 1.0, %v1896_v54  ;;  %v611_v46 = vld [vmem:[%s3312_s1 + $0x60] sm:$0xff] }
  0x9c   :  { %v1191_v62 = vmul.f32 %v780_v59, %v603_v50  ;;  %v1192_v63 = vmul.f32 %v780_v59, %v604_v51  ;;  %v770_v0 = vpop.permute.xlu0 %769  ;;  %1094 = vperm.xlu1 %1614, %v1874_v27   ;;  %1915 = vrcp.f32 %v420_v48  ;;  %v610_v27 = vld [vmem:[%s3312_s1 + $0x58] sm:$0xff] }
  0x9d   :  { %v1898_v3 = vpop.eup %1897  ;;  %v1187_v4 = vmul.f32 %v770_v0, %v599_v55  ;;  %v1188_v5 = vmul.f32 %v770_v0, %v600_v56  ;;  %1917 = vrcp.f32 %v419_v52 }
  0x9e   :  { %v1900_v10 = vpop.eup %1899  ;;  %1360 = vst [vmem:[%s3313_s2 + $0x20] sm:$0xff] %v1191_v62  ;;  %1361 = vst.msk [vmem:[%s3313_s2 + $0x28] sm:$0xff] %vm1356_vm0, %v1192_v63  ;;  %1089 = vperm.xlu0 %1613, %v1898_v3   ;;  %1919 = vrcp.f32 %v422_v57  ;;  %v617_v57 = vld [vmem:[%s3312_s1 + $0x90] sm:$0xff] }
  0x9f   :  { %v1902_v15 = vpop.eup %1901  ;;  %1355 = vst [vmem:[%s3313_s2] sm:$0xff] %v1187_v4  ;;  %1357 = vst.msk [vmem:[%s3313_s2 + $0x8] sm:$0xff] %vm1356_vm0, %v1188_v5  ;;  %v785_v16 = vpop.permute.xlu1 %784  ;;  %1921 = vrcp.f32 %v421_v60  ;;  %v615_v60 = vld [vmem:[%s3312_s1 + $0x80] sm:$0xff] }
  0xa0   :  { %v1904_v18 = vpop.eup %1903  ;;  %v1193_v19 = vmul.f32 %v785_v16, %v605_v6  ;;  %v1194_v20 = vmul.f32 %v785_v16, %v606_v7  ;;  %v775_v21 = vpop.permute.xlu0 %774  ;;  %1104 = vperm.xlu1 %1614, %v1900_v10   ;;  %1923 = vpow2.f32 %v1607_v1  ;;  %v622_v10 = vld [vmem:[%s3312_s1 + $0xb8] sm:$0xff] }
  0xa1   :  { %v1906_v23 = vpop.eup %1905  ;;  %v1189_v24 = vmul.f32 %v775_v21, %v601_v11  ;;  %v1190_v25 = vmul.f32 %v775_v21, %v602_v12  ;;  %1925 = vpow2.f32 %v1606_v8  ;;  %v424_v34 = vadd.f32 1.0, %v1904_v18 }
  0xa2   :  { %v1908_v29 = vpop.eup %1907  ;;  %1362 = vst [vmem:[%s3313_s2 + $0x30] sm:$0xff] %v1193_v19  ;;  %1363 = vst.msk [vmem:[%s3313_s2 + $0x38] sm:$0xff] %vm1356_vm0, %v1194_v20  ;;  %1099 = vperm.xlu0 %1613, %v1902_v15   ;;  %1927 = vpow2.f32 %v1609_v13  ;;  %v619_v13 = vld [vmem:[%s3312_s1 + $0xa0] sm:$0xff] }
  0xa3   :  { %v1910_v32 = vpop.eup %1909  ;;  %1358 = vst [vmem:[%s3313_s2 + $0x10] sm:$0xff] %v1189_v24  ;;  %1359 = vst.msk [vmem:[%s3313_s2 + $0x18] sm:$0xff] %vm1356_vm0, %v1190_v25  ;;  %v795_v33 = vpop.permute.xlu1 %794  ;;  %1929 = vpow2.f32 %v1608_v17  ;;  %v423_v44 = vadd.f32 1.0, %v1908_v29  ;;  %v625_v25 = vld [vmem:[%s3312_s1 + $0xd0] sm:$0xff] }
  0xa4   :  { %v1912_v35 = vpop.eup %1911  ;;  %v1197_v36 = vmul.f32 %v795_v33, %v609_v26  ;;  %v1198_v37 = vmul.f32 %v795_v33, %v610_v27  ;;  %v790_v38 = vpop.permute.xlu0 %789  ;;  %1114 = vperm.xlu1 %1614, %v1906_v23   ;;  %1931 = vpow2.f32 %v1611_v22  ;;  %v626_v26 = vld [vmem:[%s3312_s1 + $0xd8] sm:$0xff] }
  0xa5   :  { %v1914_v39 = vpop.eup %1913  ;;  %v1195_v40 = vmul.f32 %v790_v38, %v607_v30  ;;  %v1196_v41 = vmul.f32 %v790_v38, %v608_v31  ;;  %1933 = vpow2.f32 %v1610_v28  ;;  %v623_v30 = vld [vmem:[%s3312_s1 + $0xc0] sm:$0xff]  ;;  %v624_v31 = vld [vmem:[%s3312_s1 + $0xc8] sm:$0xff] }
  0xa6   :  { %v1916_v45 = vpop.eup %1915  ;;  %1366 = vst [vmem:[%s3313_s2 + $0x50] sm:$0xff] %v1197_v36  ;;  %1367 = vst.msk [vmem:[%s3313_s2 + $0x58] sm:$0xff] %vm1356_vm0, %v1198_v37  ;;  %1109 = vperm.xlu0 %1613, %v1910_v32   ;;  %1935 = vrcp.f32 %v424_v34  ;;  %v630_v36 = vld [vmem:[%s3312_s1 + $0xf8] sm:$0xff] }
  0xa7   :  { %v1918_v48 = vpop.eup %1917  ;;  %1364 = vst [vmem:[%s3313_s2 + $0x40] sm:$0xff] %v1195_v40  ;;  %1365 = vst.msk [vmem:[%s3313_s2 + $0x48] sm:$0xff] %vm1356_vm0, %v1196_v41  ;;  %v805_v49 = vpop.permute.xlu1 %804  ;;  %1937 = vrcp.f32 %v423_v44  ;;  %v627_v41 = vld [vmem:[%s3312_s1 + $0xe0] sm:$0xff] }
  0xa8   :  { %v1920_v50 = vpop.eup %1919  ;;  %v1201_v51 = vmul.f32 %v805_v49, %v613_v42  ;;  %v1202_v52 = vmul.f32 %v805_v49, %v614_v43  ;;  %v800_v53 = vpop.permute.xlu0 %799  ;;  %1124 = vperm.xlu1 %1614, %v1912_v35   ;;  %v629_v35 = vld [vmem:[%s3312_s1 + $0xf0] sm:$0xff]  ;;  %v628_v42 = vld [vmem:[%s3312_s1 + $0xe8] sm:$0xff]  ;;  %v634_v49 = vld [vmem:[%s3312_s1 + $0x118] sm:$0xff] }
  0xa9   :  { %v1922_v54 = vpop.eup %1921  ;;  %v1199_v55 = vmul.f32 %v800_v53, %v611_v46  ;;  %v1200_v56 = vmul.f32 %v800_v53, %v612_v47 }
  0xaa   :  { %v1924_v59 = vpop.eup %1923  ;;  %1370 = vst [vmem:[%s3313_s2 + $0x70] sm:$0xff] %v1201_v51  ;;  %1371 = vst.msk [vmem:[%s3313_s2 + $0x78] sm:$0xff] %vm1356_vm0, %v1202_v52  ;;  %1119 = vperm.xlu0 %1613, %v1914_v39  }
  0xab   :  { %v1926_v62 = vpop.eup %1925  ;;  %1368 = vst [vmem:[%s3313_s2 + $0x60] sm:$0xff] %v1199_v55  ;;  %1369 = vst.msk [vmem:[%s3313_s2 + $0x68] sm:$0xff] %vm1356_vm0, %v1200_v56  ;;  %v815_v63 = vpop.permute.xlu1 %814  ;;  %v426_v0 = vadd.f32 1.0, %v1924_v59  ;;  %v632_v55 = vld [vmem:[%s3312_s1 + $0x108] sm:$0xff] }
  0xac   :  { %v1928_v1 = vpop.eup %1927  ;;  %v1205_v2 = vmul.f32 %v815_v63, %v617_v57  ;;  %v1206_v3 = vmul.f32 %v815_v63, %v618_v58  ;;  %v810_v4 = vpop.permute.xlu0 %809  ;;  %1134 = vperm.xlu1 %1614, %v1916_v45   ;;  %v425_v5 = vadd.f32 1.0, %v1926_v62 }
  0xad   :  { %v1930_v6 = vpop.eup %1929  ;;  %v1203_v7 = vmul.f32 %v810_v4, %v615_v60  ;;  %v1204_v8 = vmul.f32 %v810_v4, %v616_v61  ;;  %1939 = vrcp.f32 %v426_v0  ;;  %v428_v11 = vadd.f32 1.0, %v1928_v1  ;;  %v637_v60 = vld [vmem:[%s3312_s1 + $0x130] sm:$0xff]  ;;  %v638_v61 = vld [vmem:[%s3312_s1 + $0x138] sm:$0xff] }
  0xae   :  { %v1932_v12 = vpop.eup %1931  ;;  %1374 = vst [vmem:[%s3313_s2 + $0x90] sm:$0xff] %v1205_v2  ;;  %1375 = vst.msk [vmem:[%s3313_s2 + $0x98] sm:$0xff] %vm1356_vm0, %v1206_v3  ;;  %1129 = vperm.xlu0 %1613, %v1918_v48   ;;  %1941 = vrcp.f32 %v425_v5  ;;  %v427_v15 = vadd.f32 1.0, %v1930_v6  ;;  %v633_v48 = vld [vmem:[%s3312_s1 + $0x110] sm:$0xff]  ;;  %v635_v2 = vld [vmem:[%s3312_s1 + $0x120] sm:$0xff] }
  0xaf   :  { %v1934_v16 = vpop.eup %1933  ;;  %1372 = vst [vmem:[%s3313_s2 + $0x80] sm:$0xff] %v1203_v7  ;;  %1373 = vst.msk [vmem:[%s3313_s2 + $0x88] sm:$0xff] %vm1356_vm0, %v1204_v8  ;;  %v825_v17 = vpop.permute.xlu1 %824  ;;  %1943 = vrcp.f32 %v428_v11  ;;  %v430_v18 = vadd.f32 1.0, %v1932_v12  ;;  %v636_v3 = vld [vmem:[%s3312_s1 + $0x128] sm:$0xff]  ;;  %v641_v7 = vld [vmem:[%s3312_s1 + $0x150] sm:$0xff] }
  0xb0   :  { %v1209_v19 = vmul.f32 %v825_v17, %v621_v9  ;;  %v1210_v20 = vmul.f32 %v825_v17, %v622_v10  ;;  %v820_v21 = vpop.permute.xlu0 %819  ;;  %1144 = vperm.xlu1 %1614, %v1920_v50   ;;  %v1936_v22 = vpop.eup %1935  ;;  %1945 = vrcp.f32 %v427_v15  ;;  %v429_v27 = vadd.f32 1.0, %v1934_v16  ;;  %v642_v8 = vld [vmem:[%s3312_s1 + $0x158] sm:$0xff]  ;;  %v639_v12 = vld [vmem:[%s3312_s1 + $0x140] sm:$0xff]  ;;  %v645_v17 = vld [vmem:[%s3312_s1 + $0x170] sm:$0xff] }
  0xb1   :  { %v1207_v23 = vmul.f32 %v820_v21, %v619_v13  ;;  %v1208_v24 = vmul.f32 %v820_v21, %v620_v14  ;;  %v1938_v28 = vpop.eup %1937  ;;  %1947 = vrcp.f32 %v430_v18  ;;  %v640_v13 = vld [vmem:[%s3312_s1 + $0x148] sm:$0xff]  ;;  %v646_v18 = vld [vmem:[%s3312_s1 + $0x178] sm:$0xff] }
  0xb2   :  { %1378 = vst [vmem:[%s3313_s2 + $0xb0] sm:$0xff] %v1209_v19  ;;  %1379 = vst.msk [vmem:[%s3313_s2 + $0xb8] sm:$0xff] %vm1356_vm0, %v1210_v20  ;;  %1139 = vperm.xlu0 %1613, %v1922_v54   ;;  %1949 = vrcp.f32 %v429_v27  ;;  %v631_v54 = vld [vmem:[%s3312_s1 + $0x100] sm:$0xff]  ;;  %v649_v27 = vld [vmem:[%s3312_s1 + $0x190] sm:$0xff] }
  0xb3   :  { %1376 = vst [vmem:[%s3313_s2 + $0xa0] sm:$0xff] %v1207_v23  ;;  %1377 = vst.msk [vmem:[%s3313_s2 + $0xa8] sm:$0xff] %vm1356_vm0, %v1208_v24  ;;  %v835_v29 = vpop.permute.xlu1 %834  ;;  %v644_v23 = vld [vmem:[%s3312_s1 + $0x168] sm:$0xff] }
  0xb4   :  { %v1213_v32 = vmul.f32 %v835_v29, %v625_v25  ;;  %v1214_v33 = vmul.f32 %v835_v29, %v626_v26  ;;  %1154 = vperm.xlu1 %1614, %v1936_v22   ;;  %v643_v22 = vld [vmem:[%s3312_s1 + $0x160] sm:$0xff] }
  0xb5   :  { %v830_v34 = vpop.permute.xlu0 %829 }
  0xb6   :  { %1382 = vst [vmem:[%s3313_s2 + $0xd0] sm:$0xff] %v1213_v32  ;;  %1383 = vst.msk [vmem:[%s3313_s2 + $0xd8] sm:$0xff] %vm1356_vm0, %v1214_v33  ;;  %v1211_v37 = vmul.f32 %v830_v34, %v623_v30  ;;  %v1212_v38 = vmul.f32 %v830_v34, %v624_v31  ;;  %1149 = vperm.xlu0 %1613, %v1938_v28   ;;  %v650_v28 = vld [vmem:[%s3312_s1 + $0x198] sm:$0xff]  ;;  %v647_v32 = vld [vmem:[%s3312_s1 + $0x180] sm:$0xff] }
  0xb7   :  { %v1940_v39 = vpop.eup %1939  ;;  %v845_v40 = vpop.permute.xlu1 %844  ;;  %v648_v33 = vld [vmem:[%s3312_s1 + $0x188] sm:$0xff] }
  0xb8   :  { %v1942_v43 = vpop.eup %1941  ;;  %1380 = vst [vmem:[%s3313_s2 + $0xc0] sm:$0xff] %v1211_v37  ;;  %1381 = vst.msk [vmem:[%s3313_s2 + $0xc8] sm:$0xff] %vm1356_vm0, %v1212_v38  ;;  %v1217_v44 = vmul.f32 %v845_v40, %v629_v35  ;;  %v1218_v45 = vmul.f32 %v845_v40, %v630_v36  ;;  %1164 = vperm.xlu1 %1614, %v1940_v39   ;;  %v653_v37 = vld [vmem:[%s3312_s1 + $0x1b0] sm:$0xff]  ;;  %v654_v38 = vld [vmem:[%s3312_s1 + $0x1b8] sm:$0xff] }
  0xb9   :  { %v1944_v46 = vpop.eup %1943  ;;  %v840_v47 = vpop.permute.xlu0 %839 }
  0xba   :  { %1386 = vst [vmem:[%s3313_s2 + $0xf0] sm:$0xff] %v1217_v44  ;;  %1387 = vst.msk [vmem:[%s3313_s2 + $0xf8] sm:$0xff] %vm1356_vm0, %v1218_v45  ;;  %v1215_v50 = vmul.f32 %v840_v47, %v627_v41  ;;  %v1216_v51 = vmul.f32 %v840_v47, %v628_v42  ;;  %1159 = vperm.xlu0 %1613, %v1942_v43   ;;  %v1946_v52 = vpop.eup %1945  ;;  %v651_v42 = vld [vmem:[%s3312_s1 + $0x1a0] sm:$0xff]  ;;  %v652_v43 = vld [vmem:[%s3312_s1 + $0x1a8] sm:$0xff] }
  0xbb   :  { %v855_v53 = vpop.permute.xlu1 %854  ;;  %v1948_v58 = vpop.eup %1947  ;;  %v657_v47 = vld [vmem:[%s3312_s1 + $0x1d0] sm:$0xff] }
  0xbc   :  { %1384 = vst [vmem:[%s3313_s2 + $0xe0] sm:$0xff] %v1215_v50  ;;  %1385 = vst.msk [vmem:[%s3313_s2 + $0xe8] sm:$0xff] %vm1356_vm0, %v1216_v51  ;;  %v1221_v56 = vmul.f32 %v855_v53, %v633_v48  ;;  %v1222_v57 = vmul.f32 %v855_v53, %v634_v49  ;;  %1174 = vperm.xlu1 %1614, %v1944_v46   ;;  %v1950_v0 = vpop.eup %1949  ;;  %v658_v48 = vld [vmem:[%s3312_s1 + $0x1d8] sm:$0xff]  ;;  %v656_v53 = vld [vmem:[%s3312_s1 + $0x1c8] sm:$0xff] }
  0xbd   :  { %v850_v59 = vpop.permute.xlu0 %849 }
  0xbe   :  { %1390 = vst [vmem:[%s3313_s2 + $0x110] sm:$0xff] %v1221_v56  ;;  %1391 = vst.msk [vmem:[%s3313_s2 + $0x118] sm:$0xff] %vm1356_vm0, %v1222_v57  ;;  %v1219_v62 = vmul.f32 %v850_v59, %v631_v54  ;;  %v1220_v63 = vmul.f32 %v850_v59, %v632_v55  ;;  %1169 = vperm.xlu0 %1613, %v1946_v52   ;;  %v655_v52 = vld [vmem:[%s3312_s1 + $0x1c0] sm:$0xff]  ;;  %v661_v57 = vld [vmem:[%s3312_s1 + $0x1f0] sm:$0xff] }
  0xbf   :  { %v865_v1 = vpop.permute.xlu1 %864 }
  0xc0   :  { %1388 = vst [vmem:[%s3313_s2 + $0x100] sm:$0xff] %v1219_v62  ;;  %1389 = vst.msk [vmem:[%s3313_s2 + $0x108] sm:$0xff] %vm1356_vm0, %v1220_v63  ;;  %v1225_v4 = vmul.f32 %v865_v1, %v637_v60  ;;  %v1226_v5 = vmul.f32 %v865_v1, %v638_v61  ;;  %1184 = vperm.xlu1 %1614, %v1948_v58   ;;  %v662_v58 = vld [vmem:[%s3312_s1 + $0x1f8] sm:$0xff]  ;;  %v659_v62 = vld [vmem:[%s3312_s1 + $0x1e0] sm:$0xff] }
  0xc1   :  { %v860_v6 = vpop.permute.xlu0 %859  ;;  %v660_v63 = vld [vmem:[%s3312_s1 + $0x1e8] sm:$0xff] }
  0xc2   :  { %1394 = vst [vmem:[%s3313_s2 + $0x130] sm:$0xff] %v1225_v4  ;;  %1395 = vst.msk [vmem:[%s3313_s2 + $0x138] sm:$0xff] %vm1356_vm0, %v1226_v5  ;;  %v1223_v9 = vmul.f32 %v860_v6, %v635_v2  ;;  %v1224_v10 = vmul.f32 %v860_v6, %v636_v3  ;;  %1179 = vperm.xlu0 %1613, %v1950_v0   ;;  %v665_v3 = vld [vmem:[%s3312_s1 + $0x210] sm:$0xff]  ;;  %v666_v4 = vld [vmem:[%s3312_s1 + $0x218] sm:$0xff] }
  0xc3   :  { %v875_v11 = vpop.permute.xlu1 %874 }
  0xc4   :  { %1392 = vst [vmem:[%s3313_s2 + $0x120] sm:$0xff] %v1223_v9  ;;  %1393 = vst.msk [vmem:[%s3313_s2 + $0x128] sm:$0xff] %vm1356_vm0, %v1224_v10  ;;  %v1229_v14 = vmul.f32 %v875_v11, %v641_v7  ;;  %v1230_v15 = vmul.f32 %v875_v11, %v642_v8  ;;  %v663_v8 = vld [vmem:[%s3312_s1 + $0x200] sm:$0xff]  ;;  %v664_v9 = vld [vmem:[%s3312_s1 + $0x208] sm:$0xff] }
  0xc5   :  { %v870_v16 = vpop.permute.xlu0 %869 }
  0xc6   :  { %1398 = vst [vmem:[%s3313_s2 + $0x150] sm:$0xff] %v1229_v14  ;;  %1399 = vst.msk [vmem:[%s3313_s2 + $0x158] sm:$0xff] %vm1356_vm0, %v1230_v15  ;;  %v1227_v19 = vmul.f32 %v870_v16, %v639_v12  ;;  %v1228_v20 = vmul.f32 %v870_v16, %v640_v13  ;;  %v669_v13 = vld [vmem:[%s3312_s1 + $0x230] sm:$0xff]  ;;  %v670_v14 = vld [vmem:[%s3312_s1 + $0x238] sm:$0xff] }
  0xc7   :  { %v885_v21 = vpop.permute.xlu1 %884 }
  0xc8   :  { %1396 = vst [vmem:[%s3313_s2 + $0x140] sm:$0xff] %v1227_v19  ;;  %1397 = vst.msk [vmem:[%s3313_s2 + $0x148] sm:$0xff] %vm1356_vm0, %v1228_v20  ;;  %v1233_v24 = vmul.f32 %v885_v21, %v645_v17  ;;  %v1234_v25 = vmul.f32 %v885_v21, %v646_v18  ;;  %v667_v18 = vld [vmem:[%s3312_s1 + $0x220] sm:$0xff]  ;;  %v668_v19 = vld [vmem:[%s3312_s1 + $0x228] sm:$0xff] }
  0xc9   :  { %v880_v26 = vpop.permute.xlu0 %879 }
  0xca   :  { %1402 = vst [vmem:[%s3313_s2 + $0x170] sm:$0xff] %v1233_v24  ;;  %1403 = vst.msk [vmem:[%s3313_s2 + $0x178] sm:$0xff] %vm1356_vm0, %v1234_v25  ;;  %v1231_v29 = vmul.f32 %v880_v26, %v643_v22  ;;  %v1232_v30 = vmul.f32 %v880_v26, %v644_v23  ;;  %v673_v23 = vld [vmem:[%s3312_s1 + $0x250] sm:$0xff]  ;;  %v674_v24 = vld [vmem:[%s3312_s1 + $0x258] sm:$0xff] }
  0xcb   :  { %v895_v31 = vpop.permute.xlu1 %894 }
  0xcc   :  { %1400 = vst [vmem:[%s3313_s2 + $0x160] sm:$0xff] %v1231_v29  ;;  %1401 = vst.msk [vmem:[%s3313_s2 + $0x168] sm:$0xff] %vm1356_vm0, %v1232_v30  ;;  %v1237_v34 = vmul.f32 %v895_v31, %v649_v27  ;;  %v1238_v35 = vmul.f32 %v895_v31, %v650_v28  ;;  %v671_v28 = vld [vmem:[%s3312_s1 + $0x240] sm:$0xff]  ;;  %v672_v29 = vld [vmem:[%s3312_s1 + $0x248] sm:$0xff] }
  0xcd   :  { %v890_v36 = vpop.permute.xlu0 %889 }
  0xce   :  { %1406 = vst [vmem:[%s3313_s2 + $0x190] sm:$0xff] %v1237_v34  ;;  %1407 = vst.msk [vmem:[%s3313_s2 + $0x198] sm:$0xff] %vm1356_vm0, %v1238_v35  ;;  %v1235_v39 = vmul.f32 %v890_v36, %v647_v32  ;;  %v1236_v40 = vmul.f32 %v890_v36, %v648_v33  ;;  %v677_v33 = vld [vmem:[%s3312_s1 + $0x270] sm:$0xff]  ;;  %v678_v34 = vld [vmem:[%s3312_s1 + $0x278] sm:$0xff] }
  0xcf   :  { %v905_v41 = vpop.permute.xlu1 %904 }
  0xd0   :  { %1404 = vst [vmem:[%s3313_s2 + $0x180] sm:$0xff] %v1235_v39  ;;  %1405 = vst.msk [vmem:[%s3313_s2 + $0x188] sm:$0xff] %vm1356_vm0, %v1236_v40  ;;  %v1241_v44 = vmul.f32 %v905_v41, %v653_v37  ;;  %v1242_v45 = vmul.f32 %v905_v41, %v654_v38  ;;  %v675_v38 = vld [vmem:[%s3312_s1 + $0x260] sm:$0xff]  ;;  %v676_v39 = vld [vmem:[%s3312_s1 + $0x268] sm:$0xff] }
  0xd1   :  { %v900_v46 = vpop.permute.xlu0 %899 }
  0xd2   :  { %1410 = vst [vmem:[%s3313_s2 + $0x1b0] sm:$0xff] %v1241_v44  ;;  %1411 = vst.msk [vmem:[%s3313_s2 + $0x1b8] sm:$0xff] %vm1356_vm0, %v1242_v45  ;;  %v1239_v49 = vmul.f32 %v900_v46, %v651_v42  ;;  %v1240_v50 = vmul.f32 %v900_v46, %v652_v43  ;;  %v681_v43 = vld [vmem:[%s3312_s1 + $0x290] sm:$0xff]  ;;  %v682_v44 = vld [vmem:[%s3312_s1 + $0x298] sm:$0xff] }
  0xd3   :  { %v915_v51 = vpop.permute.xlu1 %914 }
  0xd4   :  { %1408 = vst [vmem:[%s3313_s2 + $0x1a0] sm:$0xff] %v1239_v49  ;;  %1409 = vst.msk [vmem:[%s3313_s2 + $0x1a8] sm:$0xff] %vm1356_vm0, %v1240_v50  ;;  %v1245_v54 = vmul.f32 %v915_v51, %v657_v47  ;;  %v1246_v55 = vmul.f32 %v915_v51, %v658_v48  ;;  %v679_v48 = vld [vmem:[%s3312_s1 + $0x280] sm:$0xff]  ;;  %v680_v49 = vld [vmem:[%s3312_s1 + $0x288] sm:$0xff] }
  0xd5   :  { %v910_v56 = vpop.permute.xlu0 %909 }
  0xd6   :  { %1414 = vst [vmem:[%s3313_s2 + $0x1d0] sm:$0xff] %v1245_v54  ;;  %1415 = vst.msk [vmem:[%s3313_s2 + $0x1d8] sm:$0xff] %vm1356_vm0, %v1246_v55  ;;  %v1243_v59 = vmul.f32 %v910_v56, %v655_v52  ;;  %v1244_v60 = vmul.f32 %v910_v56, %v656_v53  ;;  %v685_v53 = vld [vmem:[%s3312_s1 + $0x2b0] sm:$0xff]  ;;  %v686_v54 = vld [vmem:[%s3312_s1 + $0x2b8] sm:$0xff] }
  0xd7   :  { %v925_v61 = vpop.permute.xlu1 %924 }
  0xd8   :  { %1412 = vst [vmem:[%s3313_s2 + $0x1c0] sm:$0xff] %v1243_v59  ;;  %1413 = vst.msk [vmem:[%s3313_s2 + $0x1c8] sm:$0xff] %vm1356_vm0, %v1244_v60  ;;  %v1249_v0 = vmul.f32 %v925_v61, %v661_v57  ;;  %v1250_v1 = vmul.f32 %v925_v61, %v662_v58  ;;  %v683_v58 = vld [vmem:[%s3312_s1 + $0x2a0] sm:$0xff]  ;;  %v684_v59 = vld [vmem:[%s3312_s1 + $0x2a8] sm:$0xff] }
  0xd9   :  { %v920_v2 = vpop.permute.xlu0 %919 }
  0xda   :  { %1418 = vst [vmem:[%s3313_s2 + $0x1f0] sm:$0xff] %v1249_v0  ;;  %1419 = vst.msk [vmem:[%s3313_s2 + $0x1f8] sm:$0xff] %vm1356_vm0, %v1250_v1  ;;  %v1247_v5 = vmul.f32 %v920_v2, %v659_v62  ;;  %v1248_v6 = vmul.f32 %v920_v2, %v660_v63  ;;  %v689_v63 = vld [vmem:[%s3312_s1 + $0x2d0] sm:$0xff]  ;;  %v690_v0 = vld [vmem:[%s3312_s1 + $0x2d8] sm:$0xff] }
  0xdb   :  { %v935_v7 = vpop.permute.xlu1 %934 }
  0xdc   :  { %1416 = vst [vmem:[%s3313_s2 + $0x1e0] sm:$0xff] %v1247_v5  ;;  %1417 = vst.msk [vmem:[%s3313_s2 + $0x1e8] sm:$0xff] %vm1356_vm0, %v1248_v6  ;;  %v1253_v10 = vmul.f32 %v935_v7, %v665_v3  ;;  %v1254_v11 = vmul.f32 %v935_v7, %v666_v4  ;;  %v687_v4 = vld [vmem:[%s3312_s1 + $0x2c0] sm:$0xff]  ;;  %v688_v5 = vld [vmem:[%s3312_s1 + $0x2c8] sm:$0xff] }
  0xdd   :  { %v930_v12 = vpop.permute.xlu0 %929 }
  0xde   :  { %1422 = vst [vmem:[%s3313_s2 + $0x210] sm:$0xff] %v1253_v10  ;;  %1423 = vst.msk [vmem:[%s3313_s2 + $0x218] sm:$0xff] %vm1356_vm0, %v1254_v11  ;;  %v1251_v15 = vmul.f32 %v930_v12, %v663_v8  ;;  %v1252_v16 = vmul.f32 %v930_v12, %v664_v9  ;;  %v693_v9 = vld [vmem:[%s3312_s1 + $0x2f0] sm:$0xff]  ;;  %v694_v10 = vld [vmem:[%s3312_s1 + $0x2f8] sm:$0xff] }
  0xdf   :  { %v945_v17 = vpop.permute.xlu1 %944 }
  0xe0   :  { %1420 = vst [vmem:[%s3313_s2 + $0x200] sm:$0xff] %v1251_v15  ;;  %1421 = vst.msk [vmem:[%s3313_s2 + $0x208] sm:$0xff] %vm1356_vm0, %v1252_v16  ;;  %v1257_v20 = vmul.f32 %v945_v17, %v669_v13  ;;  %v1258_v21 = vmul.f32 %v945_v17, %v670_v14  ;;  %v691_v14 = vld [vmem:[%s3312_s1 + $0x2e0] sm:$0xff]  ;;  %v692_v15 = vld [vmem:[%s3312_s1 + $0x2e8] sm:$0xff] }
  0xe1   :  { %v940_v22 = vpop.permute.xlu0 %939 }
  0xe2   :  { %1426 = vst [vmem:[%s3313_s2 + $0x230] sm:$0xff] %v1257_v20  ;;  %1427 = vst.msk [vmem:[%s3313_s2 + $0x238] sm:$0xff] %vm1356_vm0, %v1258_v21  ;;  %v1255_v25 = vmul.f32 %v940_v22, %v667_v18  ;;  %v1256_v26 = vmul.f32 %v940_v22, %v668_v19  ;;  %v697_v19 = vld [vmem:[%s3312_s1 + $0x310] sm:$0xff]  ;;  %v698_v20 = vld [vmem:[%s3312_s1 + $0x318] sm:$0xff] }
  0xe3   :  { %v955_v27 = vpop.permute.xlu1 %954 }
  0xe4   :  { %1424 = vst [vmem:[%s3313_s2 + $0x220] sm:$0xff] %v1255_v25  ;;  %1425 = vst.msk [vmem:[%s3313_s2 + $0x228] sm:$0xff] %vm1356_vm0, %v1256_v26  ;;  %v1261_v30 = vmul.f32 %v955_v27, %v673_v23  ;;  %v1262_v31 = vmul.f32 %v955_v27, %v674_v24  ;;  %v695_v24 = vld [vmem:[%s3312_s1 + $0x300] sm:$0xff]  ;;  %v696_v25 = vld [vmem:[%s3312_s1 + $0x308] sm:$0xff] }
  0xe5   :  { %v950_v32 = vpop.permute.xlu0 %949 }
  0xe6   :  { %1430 = vst [vmem:[%s3313_s2 + $0x250] sm:$0xff] %v1261_v30  ;;  %1431 = vst.msk [vmem:[%s3313_s2 + $0x258] sm:$0xff] %vm1356_vm0, %v1262_v31  ;;  %v1259_v35 = vmul.f32 %v950_v32, %v671_v28  ;;  %v1260_v36 = vmul.f32 %v950_v32, %v672_v29  ;;  %v701_v29 = vld [vmem:[%s3312_s1 + $0x330] sm:$0xff]  ;;  %v702_v30 = vld [vmem:[%s3312_s1 + $0x338] sm:$0xff] }
  0xe7   :  { %v965_v37 = vpop.permute.xlu1 %964 }
  0xe8   :  { %1428 = vst [vmem:[%s3313_s2 + $0x240] sm:$0xff] %v1259_v35  ;;  %1429 = vst.msk [vmem:[%s3313_s2 + $0x248] sm:$0xff] %vm1356_vm0, %v1260_v36  ;;  %v1265_v40 = vmul.f32 %v965_v37, %v677_v33  ;;  %v1266_v41 = vmul.f32 %v965_v37, %v678_v34  ;;  %v699_v34 = vld [vmem:[%s3312_s1 + $0x320] sm:$0xff]  ;;  %v700_v35 = vld [vmem:[%s3312_s1 + $0x328] sm:$0xff] }
  0xe9   :  { %v960_v42 = vpop.permute.xlu0 %959 }
  0xea   :  { %1434 = vst [vmem:[%s3313_s2 + $0x270] sm:$0xff] %v1265_v40  ;;  %1435 = vst.msk [vmem:[%s3313_s2 + $0x278] sm:$0xff] %vm1356_vm0, %v1266_v41  ;;  %v1263_v45 = vmul.f32 %v960_v42, %v675_v38  ;;  %v1264_v46 = vmul.f32 %v960_v42, %v676_v39  ;;  %v705_v39 = vld [vmem:[%s3312_s1 + $0x350] sm:$0xff]  ;;  %v706_v40 = vld [vmem:[%s3312_s1 + $0x358] sm:$0xff] }
  0xeb   :  { %v975_v47 = vpop.permute.xlu1 %974 }
  0xec   :  { %1432 = vst [vmem:[%s3313_s2 + $0x260] sm:$0xff] %v1263_v45  ;;  %1433 = vst.msk [vmem:[%s3313_s2 + $0x268] sm:$0xff] %vm1356_vm0, %v1264_v46  ;;  %v1269_v50 = vmul.f32 %v975_v47, %v681_v43  ;;  %v1270_v51 = vmul.f32 %v975_v47, %v682_v44  ;;  %v703_v44 = vld [vmem:[%s3312_s1 + $0x340] sm:$0xff]  ;;  %v704_v45 = vld [vmem:[%s3312_s1 + $0x348] sm:$0xff] }
  0xed   :  { %v970_v52 = vpop.permute.xlu0 %969 }
  0xee   :  { %1438 = vst [vmem:[%s3313_s2 + $0x290] sm:$0xff] %v1269_v50  ;;  %1439 = vst.msk [vmem:[%s3313_s2 + $0x298] sm:$0xff] %vm1356_vm0, %v1270_v51  ;;  %v1267_v55 = vmul.f32 %v970_v52, %v679_v48  ;;  %v1268_v56 = vmul.f32 %v970_v52, %v680_v49  ;;  %v709_v49 = vld [vmem:[%s3312_s1 + $0x370] sm:$0xff]  ;;  %v710_v50 = vld [vmem:[%s3312_s1 + $0x378] sm:$0xff] }
  0xef   :  { %v985_v57 = vpop.permute.xlu1 %984 }
  0xf0   :  { %1436 = vst [vmem:[%s3313_s2 + $0x280] sm:$0xff] %v1267_v55  ;;  %1437 = vst.msk [vmem:[%s3313_s2 + $0x288] sm:$0xff] %vm1356_vm0, %v1268_v56  ;;  %v1273_v60 = vmul.f32 %v985_v57, %v685_v53  ;;  %v1274_v61 = vmul.f32 %v985_v57, %v686_v54  ;;  %v707_v54 = vld [vmem:[%s3312_s1 + $0x360] sm:$0xff]  ;;  %v708_v55 = vld [vmem:[%s3312_s1 + $0x368] sm:$0xff] }
  0xf1   :  { %v980_v62 = vpop.permute.xlu0 %979 }
  0xf2   :  { %1442 = vst [vmem:[%s3313_s2 + $0x2b0] sm:$0xff] %v1273_v60  ;;  %1443 = vst.msk [vmem:[%s3313_s2 + $0x2b8] sm:$0xff] %vm1356_vm0, %v1274_v61  ;;  %v1271_v1 = vmul.f32 %v980_v62, %v683_v58  ;;  %v1272_v2 = vmul.f32 %v980_v62, %v684_v59  ;;  %v713_v59 = vld [vmem:[%s3312_s1 + $0x390] sm:$0xff]  ;;  %v714_v60 = vld [vmem:[%s3312_s1 + $0x398] sm:$0xff] }
  0xf3   :  { %v995_v3 = vpop.permute.xlu1 %994 }
  0xf4   :  { %1440 = vst [vmem:[%s3313_s2 + $0x2a0] sm:$0xff] %v1271_v1  ;;  %1441 = vst.msk [vmem:[%s3313_s2 + $0x2a8] sm:$0xff] %vm1356_vm0, %v1272_v2  ;;  %v1277_v6 = vmul.f32 %v995_v3, %v689_v63  ;;  %v1278_v7 = vmul.f32 %v995_v3, %v690_v0  ;;  %v711_v0 = vld [vmem:[%s3312_s1 + $0x380] sm:$0xff]  ;;  %v712_v1 = vld [vmem:[%s3312_s1 + $0x388] sm:$0xff] }
  0xf5   :  { %v990_v8 = vpop.permute.xlu0 %989 }
  0xf6   :  { %1446 = vst [vmem:[%s3313_s2 + $0x2d0] sm:$0xff] %v1277_v6  ;;  %1447 = vst.msk [vmem:[%s3313_s2 + $0x2d8] sm:$0xff] %vm1356_vm0, %v1278_v7  ;;  %v1275_v11 = vmul.f32 %v990_v8, %v687_v4  ;;  %v1276_v12 = vmul.f32 %v990_v8, %v688_v5  ;;  %v717_v5 = vld [vmem:[%s3312_s1 + $0x3b0] sm:$0xff]  ;;  %v718_v6 = vld [vmem:[%s3312_s1 + $0x3b8] sm:$0xff] }
  0xf7   :  { %v1005_v13 = vpop.permute.xlu1 %1004 }
  0xf8   :  { %1444 = vst [vmem:[%s3313_s2 + $0x2c0] sm:$0xff] %v1275_v11  ;;  %1445 = vst.msk [vmem:[%s3313_s2 + $0x2c8] sm:$0xff] %vm1356_vm0, %v1276_v12  ;;  %v1281_v16 = vmul.f32 %v1005_v13, %v693_v9  ;;  %v1282_v17 = vmul.f32 %v1005_v13, %v694_v10  ;;  %v715_v10 = vld [vmem:[%s3312_s1 + $0x3a0] sm:$0xff]  ;;  %v716_v11 = vld [vmem:[%s3312_s1 + $0x3a8] sm:$0xff] }
  0xf9   :  { %v1000_v18 = vpop.permute.xlu0 %999 }
  0xfa   :  { %1450 = vst [vmem:[%s3313_s2 + $0x2f0] sm:$0xff] %v1281_v16  ;;  %1451 = vst.msk [vmem:[%s3313_s2 + $0x2f8] sm:$0xff] %vm1356_vm0, %v1282_v17  ;;  %v1279_v21 = vmul.f32 %v1000_v18, %v691_v14  ;;  %v1280_v22 = vmul.f32 %v1000_v18, %v692_v15  ;;  %v721_v15 = vld [vmem:[%s3312_s1 + $0x3d0] sm:$0xff]  ;;  %v722_v16 = vld [vmem:[%s3312_s1 + $0x3d8] sm:$0xff] }
  0xfb   :  { %v1015_v23 = vpop.permute.xlu1 %1014 }
  0xfc   :  { %1448 = vst [vmem:[%s3313_s2 + $0x2e0] sm:$0xff] %v1279_v21  ;;  %1449 = vst.msk [vmem:[%s3313_s2 + $0x2e8] sm:$0xff] %vm1356_vm0, %v1280_v22  ;;  %v1285_v26 = vmul.f32 %v1015_v23, %v697_v19  ;;  %v1286_v27 = vmul.f32 %v1015_v23, %v698_v20  ;;  %v719_v20 = vld [vmem:[%s3312_s1 + $0x3c0] sm:$0xff]  ;;  %v720_v21 = vld [vmem:[%s3312_s1 + $0x3c8] sm:$0xff] }
  0xfd   :  { %v1010_v28 = vpop.permute.xlu0 %1009 }
  0xfe   :  { %1454 = vst [vmem:[%s3313_s2 + $0x310] sm:$0xff] %v1285_v26  ;;  %1455 = vst.msk [vmem:[%s3313_s2 + $0x318] sm:$0xff] %vm1356_vm0, %v1286_v27  ;;  %v1283_v31 = vmul.f32 %v1010_v28, %v695_v24  ;;  %v1284_v32 = vmul.f32 %v1010_v28, %v696_v25  ;;  %v725_v25 = vld [vmem:[%s3312_s1 + $0x3f0] sm:$0xff]  ;;  %v726_v26 = vld [vmem:[%s3312_s1 + $0x3f8] sm:$0xff] }
  0xff   :  { %v1025_v33 = vpop.permute.xlu1 %1024 }
 0x100   :  { %1452 = vst [vmem:[%s3313_s2 + $0x300] sm:$0xff] %v1283_v31  ;;  %1453 = vst.msk [vmem:[%s3313_s2 + $0x308] sm:$0xff] %vm1356_vm0, %v1284_v32  ;;  %v1289_v36 = vmul.f32 %v1025_v33, %v701_v29  ;;  %v1290_v37 = vmul.f32 %v1025_v33, %v702_v30  ;;  %v723_v30 = vld [vmem:[%s3312_s1 + $0x3e0] sm:$0xff]  ;;  %v724_v31 = vld [vmem:[%s3312_s1 + $0x3e8] sm:$0xff] }
 0x101   :  { %v1020_v38 = vpop.permute.xlu0 %1019 }
 0x102   :  { %1458 = vst [vmem:[%s3313_s2 + $0x330] sm:$0xff] %v1289_v36  ;;  %1459 = vst.msk [vmem:[%s3313_s2 + $0x338] sm:$0xff] %vm1356_vm0, %v1290_v37  ;;  %v1287_v41 = vmul.f32 %v1020_v38, %v699_v34  ;;  %v1288_v42 = vmul.f32 %v1020_v38, %v700_v35  ;;  %v729_v35 = vld [vmem:[%s3312_s1 + $0x410] sm:$0xff]  ;;  %v730_v36 = vld [vmem:[%s3312_s1 + $0x418] sm:$0xff] }
 0x103   :  { %v1035_v43 = vpop.permute.xlu1 %1034 }
 0x104   :  { %1456 = vst [vmem:[%s3313_s2 + $0x320] sm:$0xff] %v1287_v41  ;;  %1457 = vst.msk [vmem:[%s3313_s2 + $0x328] sm:$0xff] %vm1356_vm0, %v1288_v42  ;;  %v1293_v46 = vmul.f32 %v1035_v43, %v705_v39  ;;  %v1294_v47 = vmul.f32 %v1035_v43, %v706_v40  ;;  %v727_v40 = vld [vmem:[%s3312_s1 + $0x400] sm:$0xff]  ;;  %v728_v41 = vld [vmem:[%s3312_s1 + $0x408] sm:$0xff] }
 0x105   :  { %v1030_v48 = vpop.permute.xlu0 %1029 }
 0x106   :  { %1462 = vst [vmem:[%s3313_s2 + $0x350] sm:$0xff] %v1293_v46  ;;  %1463 = vst.msk [vmem:[%s3313_s2 + $0x358] sm:$0xff] %vm1356_vm0, %v1294_v47  ;;  %v1291_v51 = vmul.f32 %v1030_v48, %v703_v44  ;;  %v1292_v52 = vmul.f32 %v1030_v48, %v704_v45  ;;  %v733_v45 = vld [vmem:[%s3312_s1 + $0x430] sm:$0xff]  ;;  %v734_v46 = vld [vmem:[%s3312_s1 + $0x438] sm:$0xff] }
 0x107   :  { %v1045_v53 = vpop.permute.xlu1 %1044 }
 0x108   :  { %1460 = vst [vmem:[%s3313_s2 + $0x340] sm:$0xff] %v1291_v51  ;;  %1461 = vst.msk [vmem:[%s3313_s2 + $0x348] sm:$0xff] %vm1356_vm0, %v1292_v52  ;;  %v1297_v56 = vmul.f32 %v1045_v53, %v709_v49  ;;  %v1298_v57 = vmul.f32 %v1045_v53, %v710_v50  ;;  %v731_v50 = vld [vmem:[%s3312_s1 + $0x420] sm:$0xff]  ;;  %v732_v51 = vld [vmem:[%s3312_s1 + $0x428] sm:$0xff] }
 0x109   :  { %v1040_v58 = vpop.permute.xlu0 %1039 }
 0x10a   :  { %1466 = vst [vmem:[%s3313_s2 + $0x370] sm:$0xff] %v1297_v56  ;;  %1467 = vst.msk [vmem:[%s3313_s2 + $0x378] sm:$0xff] %vm1356_vm0, %v1298_v57  ;;  %v1295_v61 = vmul.f32 %v1040_v58, %v707_v54  ;;  %v1296_v62 = vmul.f32 %v1040_v58, %v708_v55  ;;  %v737_v55 = vld [vmem:[%s3312_s1 + $0x450] sm:$0xff]  ;;  %v738_v56 = vld [vmem:[%s3312_s1 + $0x458] sm:$0xff] }
 0x10b   :  { %v1055_v63 = vpop.permute.xlu1 %1054 }
 0x10c   :  { %1464 = vst [vmem:[%s3313_s2 + $0x360] sm:$0xff] %v1295_v61  ;;  %1465 = vst.msk [vmem:[%s3313_s2 + $0x368] sm:$0xff] %vm1356_vm0, %v1296_v62  ;;  %v1301_v2 = vmul.f32 %v1055_v63, %v713_v59  ;;  %v1302_v3 = vmul.f32 %v1055_v63, %v714_v60  ;;  %v735_v60 = vld [vmem:[%s3312_s1 + $0x440] sm:$0xff]  ;;  %v736_v61 = vld [vmem:[%s3312_s1 + $0x448] sm:$0xff] }
 0x10d   :  { %v1050_v4 = vpop.permute.xlu0 %1049 }
 0x10e   :  { %1470 = vst [vmem:[%s3313_s2 + $0x390] sm:$0xff] %v1301_v2  ;;  %1471 = vst.msk [vmem:[%s3313_s2 + $0x398] sm:$0xff] %vm1356_vm0, %v1302_v3  ;;  %v1299_v7 = vmul.f32 %v1050_v4, %v711_v0  ;;  %v1300_v8 = vmul.f32 %v1050_v4, %v712_v1  ;;  %v741_v1 = vld [vmem:[%s3312_s1 + $0x470] sm:$0xff]  ;;  %v742_v2 = vld [vmem:[%s3312_s1 + $0x478] sm:$0xff] }
 0x10f   :  { %v1065_v9 = vpop.permute.xlu1 %1064 }
 0x110   :  { %1468 = vst [vmem:[%s3313_s2 + $0x380] sm:$0xff] %v1299_v7  ;;  %1469 = vst.msk [vmem:[%s3313_s2 + $0x388] sm:$0xff] %vm1356_vm0, %v1300_v8  ;;  %v1305_v12 = vmul.f32 %v1065_v9, %v717_v5  ;;  %v1306_v13 = vmul.f32 %v1065_v9, %v718_v6  ;;  %v739_v6 = vld [vmem:[%s3312_s1 + $0x460] sm:$0xff]  ;;  %v740_v7 = vld [vmem:[%s3312_s1 + $0x468] sm:$0xff] }
 0x111   :  { %v1060_v14 = vpop.permute.xlu0 %1059 }
 0x112   :  { %1474 = vst [vmem:[%s3313_s2 + $0x3b0] sm:$0xff] %v1305_v12  ;;  %1475 = vst.msk [vmem:[%s3313_s2 + $0x3b8] sm:$0xff] %vm1356_vm0, %v1306_v13  ;;  %v1303_v17 = vmul.f32 %v1060_v14, %v715_v10  ;;  %v1304_v18 = vmul.f32 %v1060_v14, %v716_v11  ;;  %v745_v11 = vld [vmem:[%s3312_s1 + $0x490] sm:$0xff]  ;;  %v746_v12 = vld [vmem:[%s3312_s1 + $0x498] sm:$0xff] }
 0x113   :  { %v1075_v19 = vpop.permute.xlu1 %1074 }
 0x114   :  { %1472 = vst [vmem:[%s3313_s2 + $0x3a0] sm:$0xff] %v1303_v17  ;;  %1473 = vst.msk [vmem:[%s3313_s2 + $0x3a8] sm:$0xff] %vm1356_vm0, %v1304_v18  ;;  %v1309_v22 = vmul.f32 %v1075_v19, %v721_v15  ;;  %v1310_v23 = vmul.f32 %v1075_v19, %v722_v16  ;;  %v743_v16 = vld [vmem:[%s3312_s1 + $0x480] sm:$0xff]  ;;  %v744_v17 = vld [vmem:[%s3312_s1 + $0x488] sm:$0xff] }
 0x115   :  { %v1070_v24 = vpop.permute.xlu0 %1069 }
 0x116   :  { %1478 = vst [vmem:[%s3313_s2 + $0x3d0] sm:$0xff] %v1309_v22  ;;  %1479 = vst.msk [vmem:[%s3313_s2 + $0x3d8] sm:$0xff] %vm1356_vm0, %v1310_v23  ;;  %v1307_v27 = vmul.f32 %v1070_v24, %v719_v20  ;;  %v1308_v28 = vmul.f32 %v1070_v24, %v720_v21  ;;  %v749_v21 = vld [vmem:[%s3312_s1 + $0x4b0] sm:$0xff]  ;;  %v750_v22 = vld [vmem:[%s3312_s1 + $0x4b8] sm:$0xff] }
 0x117   :  { %v1085_v29 = vpop.permute.xlu1 %1084 }
 0x118   :  { %1476 = vst [vmem:[%s3313_s2 + $0x3c0] sm:$0xff] %v1307_v27  ;;  %1477 = vst.msk [vmem:[%s3313_s2 + $0x3c8] sm:$0xff] %vm1356_vm0, %v1308_v28  ;;  %v1313_v32 = vmul.f32 %v1085_v29, %v725_v25  ;;  %v1314_v33 = vmul.f32 %v1085_v29, %v726_v26  ;;  %v747_v26 = vld [vmem:[%s3312_s1 + $0x4a0] sm:$0xff]  ;;  %v748_v27 = vld [vmem:[%s3312_s1 + $0x4a8] sm:$0xff] }
 0x119   :  { %v1080_v34 = vpop.permute.xlu0 %1079 }
 0x11a   :  { %1482 = vst [vmem:[%s3313_s2 + $0x3f0] sm:$0xff] %v1313_v32  ;;  %1483 = vst.msk [vmem:[%s3313_s2 + $0x3f8] sm:$0xff] %vm1356_vm0, %v1314_v33  ;;  %v1311_v37 = vmul.f32 %v1080_v34, %v723_v30  ;;  %v1312_v38 = vmul.f32 %v1080_v34, %v724_v31  ;;  %v753_v31 = vld [vmem:[%s3312_s1 + $0x4d0] sm:$0xff]  ;;  %v754_v32 = vld [vmem:[%s3312_s1 + $0x4d8] sm:$0xff] }
 0x11b   :  { %v1095_v39 = vpop.permute.xlu1 %1094 }
 0x11c   :  { %1480 = vst [vmem:[%s3313_s2 + $0x3e0] sm:$0xff] %v1311_v37  ;;  %1481 = vst.msk [vmem:[%s3313_s2 + $0x3e8] sm:$0xff] %vm1356_vm0, %v1312_v38  ;;  %v1317_v42 = vmul.f32 %v1095_v39, %v729_v35  ;;  %v1318_v43 = vmul.f32 %v1095_v39, %v730_v36  ;;  %v751_v36 = vld [vmem:[%s3312_s1 + $0x4c0] sm:$0xff]  ;;  %v752_v37 = vld [vmem:[%s3312_s1 + $0x4c8] sm:$0xff] }
 0x11d   :  { %v1090_v44 = vpop.permute.xlu0 %1089 }
 0x11e   :  { %1486 = vst [vmem:[%s3313_s2 + $0x410] sm:$0xff] %v1317_v42  ;;  %1487 = vst.msk [vmem:[%s3313_s2 + $0x418] sm:$0xff] %vm1356_vm0, %v1318_v43  ;;  %v1315_v47 = vmul.f32 %v1090_v44, %v727_v40  ;;  %v1316_v48 = vmul.f32 %v1090_v44, %v728_v41  ;;  %v757_v41 = vld [vmem:[%s3312_s1 + $0x4f0] sm:$0xff]  ;;  %v758_v42 = vld [vmem:[%s3312_s1 + $0x4f8] sm:$0xff] }
 0x11f   :  { %v1105_v49 = vpop.permute.xlu1 %1104 }
 0x120   :  { %1484 = vst [vmem:[%s3313_s2 + $0x400] sm:$0xff] %v1315_v47  ;;  %1485 = vst.msk [vmem:[%s3313_s2 + $0x408] sm:$0xff] %vm1356_vm0, %v1316_v48  ;;  %v1321_v52 = vmul.f32 %v1105_v49, %v733_v45  ;;  %v1322_v53 = vmul.f32 %v1105_v49, %v734_v46  ;;  %v755_v46 = vld [vmem:[%s3312_s1 + $0x4e0] sm:$0xff]  ;;  %v756_v47 = vld [vmem:[%s3312_s1 + $0x4e8] sm:$0xff] }
 0x121   :  { %v1100_v54 = vpop.permute.xlu0 %1099 }
 0x122   :  { %1490 = vst [vmem:[%s3313_s2 + $0x430] sm:$0xff] %v1321_v52  ;;  %1491 = vst.msk [vmem:[%s3313_s2 + $0x438] sm:$0xff] %vm1356_vm0, %v1322_v53  ;;  %v1319_v57 = vmul.f32 %v1100_v54, %v731_v50  ;;  %v1320_v58 = vmul.f32 %v1100_v54, %v732_v51  ;;  %v761_v51 = vld [vmem:[%s3312_s1 + $0x510] sm:$0xff]  ;;  %v762_v52 = vld [vmem:[%s3312_s1 + $0x518] sm:$0xff] }
 0x123   :  { %v1115_v59 = vpop.permute.xlu1 %1114 }
 0x124   :  { %1488 = vst [vmem:[%s3313_s2 + $0x420] sm:$0xff] %v1319_v57  ;;  %1489 = vst.msk [vmem:[%s3313_s2 + $0x428] sm:$0xff] %vm1356_vm0, %v1320_v58  ;;  %v1325_v62 = vmul.f32 %v1115_v59, %v737_v55  ;;  %v1326_v63 = vmul.f32 %v1115_v59, %v738_v56  ;;  %v759_v56 = vld [vmem:[%s3312_s1 + $0x500] sm:$0xff]  ;;  %v760_v57 = vld [vmem:[%s3312_s1 + $0x508] sm:$0xff] }
 0x125   :  { %v1110_v0 = vpop.permute.xlu0 %1109 }
 0x126   :  { %1494 = vst [vmem:[%s3313_s2 + $0x450] sm:$0xff] %v1325_v62  ;;  %1495 = vst.msk [vmem:[%s3313_s2 + $0x458] sm:$0xff] %vm1356_vm0, %v1326_v63  ;;  %v1323_v3 = vmul.f32 %v1110_v0, %v735_v60  ;;  %v1324_v4 = vmul.f32 %v1110_v0, %v736_v61  ;;  %v765_v61 = vld [vmem:[%s3312_s1 + $0x530] sm:$0xff]  ;;  %v766_v62 = vld [vmem:[%s3312_s1 + $0x538] sm:$0xff] }
 0x127   :  { %v1125_v5 = vpop.permute.xlu1 %1124 }
 0x128   :  { %1492 = vst [vmem:[%s3313_s2 + $0x440] sm:$0xff] %v1323_v3  ;;  %1493 = vst.msk [vmem:[%s3313_s2 + $0x448] sm:$0xff] %vm1356_vm0, %v1324_v4  ;;  %v1329_v8 = vmul.f32 %v1125_v5, %v741_v1  ;;  %v1330_v9 = vmul.f32 %v1125_v5, %v742_v2  ;;  %v763_v2 = vld [vmem:[%s3312_s1 + $0x520] sm:$0xff]  ;;  %v764_v3 = vld [vmem:[%s3312_s1 + $0x528] sm:$0xff] }
 0x129   :  { %v1120_v10 = vpop.permute.xlu0 %1119 }
 0x12a   :  { %1498 = vst [vmem:[%s3313_s2 + $0x470] sm:$0xff] %v1329_v8  ;;  %1499 = vst.msk [vmem:[%s3313_s2 + $0x478] sm:$0xff] %vm1356_vm0, %v1330_v9  ;;  %v1327_v13 = vmul.f32 %v1120_v10, %v739_v6  ;;  %v1328_v14 = vmul.f32 %v1120_v10, %v740_v7 }
 0x12b   :  { %v1135_v15 = vpop.permute.xlu1 %1134 }
 0x12c   :  { %1496 = vst [vmem:[%s3313_s2 + $0x460] sm:$0xff] %v1327_v13  ;;  %1497 = vst.msk [vmem:[%s3313_s2 + $0x468] sm:$0xff] %vm1356_vm0, %v1328_v14  ;;  %v1333_v18 = vmul.f32 %v1135_v15, %v745_v11  ;;  %v1334_v19 = vmul.f32 %v1135_v15, %v746_v12 }
 0x12d   :  { %v1130_v20 = vpop.permute.xlu0 %1129 }
 0x12e   :  { %1502 = vst [vmem:[%s3313_s2 + $0x490] sm:$0xff] %v1333_v18  ;;  %1503 = vst.msk [vmem:[%s3313_s2 + $0x498] sm:$0xff] %vm1356_vm0, %v1334_v19  ;;  %v1331_v23 = vmul.f32 %v1130_v20, %v743_v16  ;;  %v1332_v24 = vmul.f32 %v1130_v20, %v744_v17 }
 0x12f   :  { %v1145_v25 = vpop.permute.xlu1 %1144 }
 0x130   :  { %1500 = vst [vmem:[%s3313_s2 + $0x480] sm:$0xff] %v1331_v23  ;;  %1501 = vst.msk [vmem:[%s3313_s2 + $0x488] sm:$0xff] %vm1356_vm0, %v1332_v24  ;;  %v1337_v28 = vmul.f32 %v1145_v25, %v749_v21  ;;  %v1338_v29 = vmul.f32 %v1145_v25, %v750_v22 }
 0x131   :  { %v1140_v30 = vpop.permute.xlu0 %1139 }
 0x132   :  { %1506 = vst [vmem:[%s3313_s2 + $0x4b0] sm:$0xff] %v1337_v28  ;;  %1507 = vst.msk [vmem:[%s3313_s2 + $0x4b8] sm:$0xff] %vm1356_vm0, %v1338_v29  ;;  %v1335_v33 = vmul.f32 %v1140_v30, %v747_v26  ;;  %v1336_v34 = vmul.f32 %v1140_v30, %v748_v27 }
 0x133   :  { %v1155_v35 = vpop.permute.xlu1 %1154 }
 0x134   :  { %1504 = vst [vmem:[%s3313_s2 + $0x4a0] sm:$0xff] %v1335_v33  ;;  %1505 = vst.msk [vmem:[%s3313_s2 + $0x4a8] sm:$0xff] %vm1356_vm0, %v1336_v34  ;;  %v1341_v38 = vmul.f32 %v1155_v35, %v753_v31  ;;  %v1342_v39 = vmul.f32 %v1155_v35, %v754_v32 }
 0x135   :  { %v1150_v40 = vpop.permute.xlu0 %1149 }
 0x136   :  { %1510 = vst [vmem:[%s3313_s2 + $0x4d0] sm:$0xff] %v1341_v38  ;;  %1511 = vst.msk [vmem:[%s3313_s2 + $0x4d8] sm:$0xff] %vm1356_vm0, %v1342_v39  ;;  %v1339_v43 = vmul.f32 %v1150_v40, %v751_v36  ;;  %v1340_v44 = vmul.f32 %v1150_v40, %v752_v37 }
 0x137   :  { %v1165_v45 = vpop.permute.xlu1 %1164 }
 0x138   :  { %1508 = vst [vmem:[%s3313_s2 + $0x4c0] sm:$0xff] %v1339_v43  ;;  %1509 = vst.msk [vmem:[%s3313_s2 + $0x4c8] sm:$0xff] %vm1356_vm0, %v1340_v44  ;;  %v1345_v48 = vmul.f32 %v1165_v45, %v757_v41  ;;  %v1346_v49 = vmul.f32 %v1165_v45, %v758_v42 }
 0x139   :  { %v1160_v50 = vpop.permute.xlu0 %1159 }
 0x13a   :  { %1514 = vst [vmem:[%s3313_s2 + $0x4f0] sm:$0xff] %v1345_v48  ;;  %1515 = vst.msk [vmem:[%s3313_s2 + $0x4f8] sm:$0xff] %vm1356_vm0, %v1346_v49  ;;  %v1343_v53 = vmul.f32 %v1160_v50, %v755_v46  ;;  %v1344_v54 = vmul.f32 %v1160_v50, %v756_v47 }
 0x13b   :  { %v1175_v55 = vpop.permute.xlu1 %1174 }
 0x13c   :  { %1512 = vst [vmem:[%s3313_s2 + $0x4e0] sm:$0xff] %v1343_v53  ;;  %1513 = vst.msk [vmem:[%s3313_s2 + $0x4e8] sm:$0xff] %vm1356_vm0, %v1344_v54  ;;  %v1349_v58 = vmul.f32 %v1175_v55, %v761_v51  ;;  %v1350_v59 = vmul.f32 %v1175_v55, %v762_v52 }
 0x13d   :  { %v1170_v60 = vpop.permute.xlu0 %1169 }
 0x13e   :  { %1518 = vst [vmem:[%s3313_s2 + $0x510] sm:$0xff] %v1349_v58  ;;  %1519 = vst.msk [vmem:[%s3313_s2 + $0x518] sm:$0xff] %vm1356_vm0, %v1350_v59  ;;  %v1347_v63 = vmul.f32 %v1170_v60, %v759_v56  ;;  %v1348_v0 = vmul.f32 %v1170_v60, %v760_v57 }
 0x13f   :  { %v1185_v1 = vpop.permute.xlu1 %1184 }
 0x140   :  { %1516 = vst [vmem:[%s3313_s2 + $0x500] sm:$0xff] %v1347_v63  ;;  %1517 = vst.msk [vmem:[%s3313_s2 + $0x508] sm:$0xff] %vm1356_vm0, %v1348_v0  ;;  %v1353_v4 = vmul.f32 %v1185_v1, %v765_v61  ;;  %v1354_v5 = vmul.f32 %v1185_v1, %v766_v62 }
 0x141   :  { %v1180_v6 = vpop.permute.xlu0 %1179 }
 0x142   :  { %1522 = vst [vmem:[%s3313_s2 + $0x530] sm:$0xff] %v1353_v4  ;;  %1523 = vst.msk [vmem:[%s3313_s2 + $0x538] sm:$0xff] %vm1356_vm0, %v1354_v5  ;;  %v1351_v7 = vmul.f32 %v1180_v6, %v763_v2  ;;  %v1352_v8 = vmul.f32 %v1180_v6, %v764_v3 }
 0x144   :  { %1520 = vst [vmem:[%s3313_s2 + $0x520] sm:$0xff] %v1351_v7  ;;  %1521 = vst.msk [vmem:[%s3313_s2 + $0x528] sm:$0xff] %vm1356_vm0, %v1352_v8 }

</bundles_post_ra>
